<compile_context>
chip_gen: v5e
topology: v5e:2x2
jax: 0.10.0
libtpu: 0.0.40
codegen_flags: <defaults>
</compile_context>

<pallas_src>
import functools
import math

import jax
import jax.numpy as jnp
from jax.experimental import pallas as pl
from jax.experimental.pallas import tpu as pltpu


# Sized against v7x's 64 MiB physical VMEM (leave headroom); also valid on
# v5e/v6e (128 MiB).
_VMEM_LIMIT = 48 * 1024 * 1024
_TILE_BUDGET = 32 * 1024 * 1024   # what the tile picker is allowed to use


def _pick_tile(dim, target, granules):
    """Largest divisor-of-dim tile <= target aligned to the first granule that
    works; falls back to the full dim."""
    if dim <= target:
        return dim
    for granule in granules:
        t = (min(target, dim) // granule) * granule
        while t >= granule:
            if dim % t == 0:
                return t
            t -= granule
    return dim


def _linear_tiles(M, N, K, out_itemsize):
    """Pick (tm, tn, tk) preferring single-pass K and full-M row tiles,
    shrinking targets only if the VMEM budget would be exceeded."""
    tm_t, tn_t, tk_t = 1024, 512, 8192
    while True:
        tm = _pick_tile(M, tm_t, (16, 8))
        tn = _pick_tile(N, tn_t, (256, 128))
        tk = _pick_tile(K, tk_t, (256, 128))
        need = (2 * 2 * (tm * tk + tk * tn)           # bf16 x / w, double-buffered
                + tm * tn * (4 + 2 * out_itemsize)    # f32 acc + double-buffered out
                + 2 * 2 * 4 * tn)                     # bias
        if need <= _TILE_BUDGET or (tm_t <= 128 and tn_t <= 128 and tk_t <= 256):
            return tm, tn, tk
        if tk_t > 512:
            tk_t //= 2
        elif tm_t > 128:
            tm_t //= 2
        elif tn_t > 128:
            tn_t //= 2
        else:
            tk_t //= 2


# ----------------------------------------------------------------------------
# Pallas kernels
# ----------------------------------------------------------------------------
def _linear_kernel_single_k(x_ref, w_ref, b_ref, o_ref, *, activation):
    # single reduction pass: no accumulator scratch, no init/finalize branch
    y = jnp.dot(x_ref[...], w_ref[...], preferred_element_type=jnp.float32)
    y = y + b_ref[...]
    if activation is not None:
        y = activation(y)
    o_ref[...] = y.astype(o_ref.dtype)


def _linear_kernel_multi_k(x_ref, w_ref, b_ref, o_ref, acc_ref, *, activation):
    @pl.when(pl.program_id(2) == 0)
    def _():
        acc_ref[...] = jnp.zeros_like(acc_ref)

    acc_ref[...] += jnp.dot(x_ref[...], w_ref[...],
                            preferred_element_type=jnp.float32)

    @pl.when(pl.program_id(2) == pl.num_programs(2) - 1)
    def _():
        y = acc_ref[...] + b_ref[...]
        if activation is not None:
            y = activation(y)
        o_ref[...] = y.astype(o_ref.dtype)


def _layernorm_kernel(*refs, eps, has_residual):
    # optionally fused residual add: x = x + res, then LayerNorm over last axis
    if has_residual:
        x_ref, r_ref, g_ref, b_ref, o_ref = refs
        x = x_ref[...].astype(jnp.float32) + r_ref[...].astype(jnp.float32)
    else:
        x_ref, g_ref, b_ref, o_ref = refs
        x = x_ref[...].astype(jnp.float32)
    mean = jnp.mean(x, axis=-1, keepdims=True)
    xc = x - mean
    var = jnp.mean(xc * xc, axis=-1, keepdims=True)
    inv = jax.lax.rsqrt(var + eps)
    o_ref[...] = (xc * inv * g_ref[...] + b_ref[...]).astype(o_ref.dtype)


def _attention_kernel(qkv_ref, m_ref, o_ref, o_acc, *,
                      num_heads, heads_per_group, head_dim):
    # per-batch tile: qkv [1, S, 3H] bf16 (scale already folded into Q weights),
    # m [1, 1, S] additive mask, o [1, S, H]; o_acc [S, H] f32 VMEM scratch.
    H = num_heads * head_dim
    gw = heads_per_group * head_dim
    m = m_ref[0].astype(jnp.float32)                     # [1, S] (0 / -1e9)

    # static unroll over 128-lane-aligned head groups (pairs for dh=64)
    for g0 in range(0, num_heads, heads_per_group):
        c0 = g0 * head_dim
        q_grp = qkv_ref[0, :, c0:c0 + gw]                # [S, gw]
        k_grp = qkv_ref[0, :, H + c0:H + c0 + gw]
        v_grp = qkv_ref[0, :, 2 * H + c0:2 * H + c0 + gw]
        for hh in range(heads_per_group):
            lo, hi = hh * head_dim, (hh + 1) * head_dim
            q, k, v = q_grp[:, lo:hi], k_grp[:, lo:hi], v_grp[:, lo:hi]
            s = jnp.einsum("qd,kd->qk", q, k,
                           preferred_element_type=jnp.float32)   # [S, S] f32
            s = s + m                                             # mask over keys
            s = s - jnp.max(s, axis=-1, keepdims=True)
            p = jnp.exp(s)
            denom = jnp.sum(p, axis=-1, keepdims=True)
            p = p * pl.reciprocal(denom, approx=True)             # EUP, not VPU div
            # write this head's result immediately -> bounded live ranges,
            # no concatenate relayout at the end
            o_acc[:, c0 + lo:c0 + hi] = jnp.dot(
                p.astype(v.dtype), v, preferred_element_type=jnp.float32)

    # single lane-dense [S, H] store
    o_ref[0] = o_acc[...].astype(o_ref.dtype)


# ----------------------------------------------------------------------------
# Wrappers around pallas_call
# ----------------------------------------------------------------------------
def linear(x, w, b, activation=None, out_dtype=jnp.bfloat16):
    M, K = x.shape
    K2, N = w.shape
    assert K == K2
    tm, tn, tk = _linear_tiles(M, N, K, jnp.dtype(out_dtype).itemsize)
    cost = pl.CostEstimate(
        flops=2 * M * N * K,
        transcendentals=(M * N if activation is not None else 0),
        bytes_accessed=(M * K * 2 + K * N * 2 + N * 4
                        + M * N * jnp.dtype(out_dtype).itemsize),
    )
    if tk == K:
        # single-pass reduction (preferred path for all model matmuls)
        return pl.pallas_call(
            functools.partial(_linear_kernel_single_k, activation=activation),
            out_shape=jax.ShapeDtypeStruct((M, N), out_dtype),
            grid=(M // tm, N // tn),
            in_specs=[
                pl.BlockSpec((tm, K), lambda i, j: (i, 0)),
                pl.BlockSpec((K, tn), lambda i, j: (0, j)),
                pl.BlockSpec((1, tn), lambda i, j: (0, j)),
            ],
            out_specs=pl.BlockSpec((tm, tn), lambda i, j: (i, j)),
            compiler_params=pltpu.CompilerParams(
                dimension_semantics=("parallel", "parallel"),
                vmem_limit_bytes=_VMEM_LIMIT,
            ),
            cost_estimate=cost,
        )(x, w, b)

    # fallback: tiled reduction with f32 VMEM accumulator
    return pl.pallas_call(
        functools.partial(_linear_kernel_multi_k, activation=activation),
        out_shape=jax.ShapeDtypeStruct((M, N), out_dtype),
        grid=(M // tm, N // tn, K // tk),
        in_specs=[
            pl.BlockSpec((tm, tk), lambda i, j, k: (i, k)),
            pl.BlockSpec((tk, tn), lambda i, j, k: (k, j)),
            pl.BlockSpec((1, tn), lambda i, j, k: (0, j)),
        ],
        out_specs=pl.BlockSpec((tm, tn), lambda i, j, k: (i, j)),
        scratch_shapes=[pltpu.VMEM((tm, tn), jnp.float32)],
        compiler_params=pltpu.CompilerParams(
            dimension_semantics=("parallel", "parallel", "arbitrary"),
            vmem_limit_bytes=_VMEM_LIMIT,
        ),
        cost_estimate=cost,
    )(x, w, b)


def layernorm(x, g, b, residual=None, eps=1e-12, out_dtype=jnp.bfloat16,
              tm_target=512):
    # eps=1e-12 matches BERT's LayerNorm convention.
    M, H = x.shape
    tm = _pick_tile(M, tm_target, (16, 8))      # bf16-native 16-row granule
    row_spec = pl.BlockSpec((tm, H), lambda i: (i, 0))
    vec_spec = pl.BlockSpec((1, H), lambda i: (0, 0))
    has_res = residual is not None
    in_specs = [row_spec] + ([row_spec] if has_res else []) + [vec_spec, vec_spec]
    operands = (x,) + ((residual,) if has_res else ()) + (g, b)
    return pl.pallas_call(
        functools.partial(_layernorm_kernel, eps=eps, has_residual=has_res),
        out_shape=jax.ShapeDtypeStruct((M, H), out_dtype),
        grid=(M // tm,),
        in_specs=in_specs,
        out_specs=row_spec,
        compiler_params=pltpu.CompilerParams(
            dimension_semantics=("parallel",),
            vmem_limit_bytes=_VMEM_LIMIT,
        ),
    )(*operands)


def _head_group_size(num_heads, head_dim):
    """Smallest head-group whose combined width is a multiple of 128 lanes
    (so ref slices are lane-aligned); falls back to all heads."""
    for g in range(1, num_heads + 1):
        if num_heads % g == 0 and (g * head_dim) % 128 == 0:
            return g
    return num_heads


def mha_attention(qkv, mask_add, num_heads, out_dtype=jnp.bfloat16):
    # qkv: [B, S, 3H] fused projections (Q pre-scaled by 1/sqrt(dh) at init);
    # mask_add: [B, 1, S] additive (0 / -1e9)
    B, S, H3 = qkv.shape
    H = H3 // 3
    dh = H // num_heads
    hpg = _head_group_size(num_heads, dh)
    cost = pl.CostEstimate(
        flops=4 * B * num_heads * S * S * dh,
        transcendentals=B * num_heads * S * (S + 1),
        bytes_accessed=B * S * H3 * 2 + B * S * 4 + B * S * H * 2,
    )
    # TODO(synk): for very long S (S^2 f32 scores) or tiny B on v7x, add a
    # q-tile / head-group grid axis with online softmax to cut VMEM and fill
    # both TensorCores.
    return pl.pallas_call(
        functools.partial(_attention_kernel, num_heads=num_heads,
                          heads_per_group=hpg, head_dim=dh),
        out_shape=jax.ShapeDtypeStruct((B, S, H), out_dtype),
        grid=(B,),
        in_specs=[
            pl.BlockSpec((1, S, H3), lambda bi: (bi, 0, 0)),
            pl.BlockSpec((1, 1, S), lambda bi: (bi, 0, 0)),
        ],
        out_specs=pl.BlockSpec((1, S, H), lambda bi: (bi, 0, 0)),
        scratch_shapes=[pltpu.VMEM((S, H), jnp.float32)],
        compiler_params=pltpu.CompilerParams(
            dimension_semantics=("parallel",),
            vmem_limit_bytes=_VMEM_LIMIT,
        ),
        cost_estimate=cost,
    )(qkv, mask_add)


# ----------------------------------------------------------------------------
# Model: synthetic 1-layer encoder + CLS pooling + dropout(eval) + classifier
# ----------------------------------------------------------------------------
_CLASS_PAD = 128  # lane-dense classifier slab; real logits sliced outside


def init_params(key, vocab, max_seq, hidden, num_heads, ffn, num_classes):
    ks = jax.random.split(key, 8)
    s = 0.02
    f32, bf16 = jnp.float32, jnp.bfloat16

    def w(k, shape):
        return (jax.random.normal(k, shape, f32) * s).astype(bf16)

    # fused QKV projection [H, 3H] = [wq | wk | wv]; 1/sqrt(dh) folded into the
    # f32 master Q weights (removes the per-head scale mult in the kernel).
    dh = hidden // num_heads
    w_qkv = jax.random.normal(ks[2], (hidden, 3 * hidden), f32) * s
    w_qkv = w_qkv.at[:, :hidden].multiply(1.0 / math.sqrt(dh))

    wc = jax.random.normal(ks[6], (hidden, num_classes), f32) * s
    wc_pad = jnp.zeros((hidden, _CLASS_PAD), f32).at[:, :num_classes].set(wc)

    p = {
        "tok_emb": jax.random.normal(ks[0], (vocab, hidden), f32) * s,
        "pos_emb": jax.random.normal(ks[1], (max_seq, hidden), f32) * s,
        "ln_emb_g": jnp.ones((1, hidden), f32),
        "ln_emb_b": jnp.zeros((1, hidden), f32),
        "w_qkv": w_qkv.astype(bf16),
        "b_qkv": jnp.zeros((1, 3 * hidden), f32),
        "wo": w(ks[3], (hidden, hidden)),
        "bo": jnp.zeros((1, hidden), f32),
        "ln1_g": jnp.ones((1, hidden), f32),
        "ln1_b": jnp.zeros((1, hidden), f32),
        "w1": w(ks[4], (hidden, ffn)),
        "b1": jnp.zeros((1, ffn), f32),
        "w2": w(ks[5], (ffn, hidden)),
        "b2": jnp.zeros((1, hidden), f32),
        "ln2_g": jnp.ones((1, hidden), f32),
        "ln2_b": jnp.zeros((1, hidden), f32),
        # lane-padded classifier head (columns >= num_classes are zero)
        "wc": wc_pad.astype(bf16),
        "bc": jnp.zeros((1, _CLASS_PAD), f32),
    }
    return p


def sentiment_classifier_forward(params, input_ids, attention_mask,
                                 num_heads, num_classes):
    B, S = input_ids.shape
    H = params["tok_emb"].shape[1]

    # ---- embeddings (token gather + positional add in XLA glue; LN in Pallas) ----
    # cast to bf16 before the memory-bound LN kernel (stats are f32 in-kernel)
    x = (params["tok_emb"][input_ids]
         + params["pos_emb"][None, :S, :]).astype(jnp.bfloat16)            # [B,S,H]
    xf = layernorm(x.reshape(B * S, H),
                   params["ln_emb_g"], params["ln_emb_b"])                  # bf16 [B*S,H]

    # additive attention mask: 0 where attended, -1e9 where padded
    mask_add = ((1.0 - attention_mask.astype(jnp.float32)) * -1e9)[:, None, :]  # [B,1,S]

    # ---- multi-head self-attention: fused QKV matmul + per-batch attention kernel ----
    qkv = linear(xf, params["w_qkv"], params["b_qkv"])                      # [B*S, 3H]
    attn = mha_attention(qkv.reshape(B, S, 3 * H), mask_add, num_heads)     # [B, S, H]
    attn = linear(attn.reshape(B * S, H), params["wo"], params["bo"])       # [B*S, H]
    x1 = layernorm(attn, params["ln1_g"], params["ln1_b"], residual=xf)     # fused add+LN

    # ---- feed-forward (GELU fused into the first matmul's epilogue) ----
    h = linear(x1, params["w1"], params["b1"], activation=jax.nn.gelu)
    h = linear(h, params["w2"], params["b2"])
    x2 = layernorm(h, params["ln2_g"], params["ln2_b"], residual=x1)        # fused add+LN

    last_hidden_state = x2.reshape(B, S, H)

    # ---- head: pooled = last_hidden_state[:, 0, :]; dropout; classifier ----
    pooled = last_hidden_state[:, 0, :]                                     # [B, H] (CLS)
    # nn.Dropout is identity in eval mode (inference semantics).
    # TODO(synk): training-mode stochastic dropout (p=0.1) omitted.
    logits_pad = linear(pooled, params["wc"], params["bc"],
                        out_dtype=jnp.float32)                              # [B, 128]
    return logits_pad[:, :num_classes]                                      # [B, C]


if __name__ == "__main__":
    # small, deterministic shapes
    B, S, H, NH, FFN, C, VOCAB = 2, 8, 32, 4, 64, 3, 50

    key = jax.random.PRNGKey(0)
    k_param, k_ids = jax.random.split(key)

    params = init_params(k_param, VOCAB, S, H, NH, FFN, C)

    input_ids = jax.random.randint(k_ids, (B, S), 0, VOCAB, dtype=jnp.int32)
    attention_mask = jnp.ones((B, S), dtype=jnp.int32)
    attention_mask = attention_mask.at[1, 6:].set(0)  # pad tail of 2nd sequence

    fwd = jax.jit(sentiment_classifier_forward, static_argnums=(3, 4))
    logits = fwd(params, input_ids, attention_mask, NH, C)
    jax.block_until_ready(logits)

    assert logits.shape == (B, C)
    assert bool(jnp.all(jnp.isfinite(logits)))
    print("KERNEL_OK")
</pallas_src>

<mosaic_0001>
module attributes {stable_mosaic.version = 11 : i64} {
  func.func @_layernorm_kernel(%arg0: i32, %arg1: memref<16x32xbf16, #tpu.memory_space<vmem>>, %arg2: memref<1x32xf32, #tpu.memory_space<vmem>>, %arg3: memref<1x32xf32, #tpu.memory_space<vmem>>, %arg4: memref<16x32xbf16, #tpu.memory_space<vmem>>) attributes {dimension_semantics = [#tpu.dimension_semantics<parallel>], iteration_bounds = array<i64: 1>, scalar_prefetch = 0 : i64, scratch_operands = 0 : i64, tpu.core_type = #tpu.core_type<tc>, window_params = [{transform_indices = @transform_0, window_bounds = array<i64: 16, 32>}, {pipeline_mode = #tpu.pipeline_mode<synchronous>, transform_indices = @transform_1, window_bounds = array<i64: 1, 32>}, {pipeline_mode = #tpu.pipeline_mode<synchronous>, transform_indices = @transform_2, window_bounds = array<i64: 1, 32>}, {transform_indices = @transform_3, window_bounds = array<i64: 16, 32>}]} {
    %c0 = arith.constant 0 : index
    %c0_0 = arith.constant 0 : index
    %0 = vector.load %arg1[%c0, %c0_0] : memref<16x32xbf16, #tpu.memory_space<vmem>>, vector<16x32xbf16>
    %1 = arith.extf %0 : vector<16x32xbf16> to vector<16x32xf32>
    %cst = arith.constant dense<0.000000e+00> : vector<16xf32>
    %2 = vector.multi_reduction <add>, %1, %cst [1] : vector<16x32xf32> to vector<16xf32>
    %3 = vector.shape_cast %2 : vector<16xf32> to vector<16x1xf32>
    %cst_1 = arith.constant 3.200000e+01 : f32
    %4 = vector.broadcast %cst_1 : f32 to vector<16x1xf32>
    %5 = arith.divf %3, %4 : vector<16x1xf32>
    %6 = vector.broadcast %5 : vector<16x1xf32> to vector<16x32xf32>
    %7 = arith.subf %1, %6 : vector<16x32xf32>
    %8 = arith.mulf %7, %7 : vector<16x32xf32>
    %cst_2 = arith.constant dense<0.000000e+00> : vector<16xf32>
    %9 = vector.multi_reduction <add>, %8, %cst_2 [1] : vector<16x32xf32> to vector<16xf32>
    %10 = vector.shape_cast %9 : vector<16xf32> to vector<16x1xf32>
    %cst_3 = arith.constant 3.200000e+01 : f32
    %11 = vector.broadcast %cst_3 : f32 to vector<16x1xf32>
    %12 = arith.divf %10, %11 : vector<16x1xf32>
    %cst_4 = arith.constant 9.99999996E-13 : f32
    %13 = vector.broadcast %cst_4 : f32 to vector<16x1xf32>
    %14 = arith.addf %12, %13 : vector<16x1xf32>
    %15 = math.rsqrt %14 : vector<16x1xf32>
    %16 = vector.broadcast %15 : vector<16x1xf32> to vector<16x32xf32>
    %17 = arith.mulf %7, %16 : vector<16x32xf32>
    %c0_5 = arith.constant 0 : index
    %c0_6 = arith.constant 0 : index
    %18 = vector.load %arg2[%c0_5, %c0_6] : memref<1x32xf32, #tpu.memory_space<vmem>>, vector<1x32xf32>
    %19 = vector.broadcast %18 : vector<1x32xf32> to vector<16x32xf32>
    %20 = arith.mulf %17, %19 : vector<16x32xf32>
    %c0_7 = arith.constant 0 : index
    %c0_8 = arith.constant 0 : index
    %21 = vector.load %arg3[%c0_7, %c0_8] : memref<1x32xf32, #tpu.memory_space<vmem>>, vector<1x32xf32>
    %22 = vector.broadcast %21 : vector<1x32xf32> to vector<16x32xf32>
    %23 = arith.addf %20, %22 : vector<16x32xf32>
    %24 = arith.truncf %23 : vector<16x32xf32> to vector<16x32xbf16>
    %c0_9 = arith.constant 0 : index
    %c0_10 = arith.constant 0 : index
    %25 = vector.load %arg4[%c0_9, %c0_10] : memref<16x32xbf16, #tpu.memory_space<vmem>>, vector<16x32xbf16>
    tpu.vector_store %arg4[%c0_9, %c0_10], %24 {strides = array<i32>} : memref<16x32xbf16, #tpu.memory_space<vmem>>, vector<16x32xbf16>,
    return
  }
  func.func @transform_0(%arg0: i32) -> (i32, i32) {
    %c0_i32 = arith.constant 0 : i32
    %c0_i32_0 = arith.constant 0 : i32
    return %arg0, %c0_i32 : i32, i32
  }
  func.func @transform_1(%arg0: i32) -> (i32, i32) {
    %c0_i32 = arith.constant 0 : i32
    %c0_i32_0 = arith.constant 0 : i32
    %c0_i32_1 = arith.constant 0 : i32
    return %c0_i32, %c0_i32_0 : i32, i32
  }
  func.func @transform_2(%arg0: i32) -> (i32, i32) {
    %c0_i32 = arith.constant 0 : i32
    %c0_i32_0 = arith.constant 0 : i32
    %c0_i32_1 = arith.constant 0 : i32
    return %c0_i32, %c0_i32_0 : i32, i32
  }
  func.func @transform_3(%arg0: i32) -> (i32, i32) {
    %c0_i32 = arith.constant 0 : i32
    %c0_i32_0 = arith.constant 0 : i32
    return %arg0, %c0_i32 : i32, i32
  }
}

module attributes {stable_mosaic.version = 11 : i64} {
  func.func @_linear_kernel_single_k(%arg0: i32, %arg1: i32, %arg2: memref<16x32xbf16, #tpu.memory_space<vmem>>, %arg3: memref<32x96xbf16, #tpu.memory_space<vmem>>, %arg4: memref<1x96xf32, #tpu.memory_space<vmem>>, %arg5: memref<16x96xbf16, #tpu.memory_space<vmem>>) attributes {dimension_semantics = [#tpu.dimension_semantics<parallel>, #tpu.dimension_semantics<parallel>], iteration_bounds = array<i64: 1, 1>, scalar_prefetch = 0 : i64, scratch_operands = 0 : i64, tpu.core_type = #tpu.core_type<tc>, window_params = [{transform_indices = @transform_0, window_bounds = array<i64: 16, 32>}, {transform_indices = @transform_1, window_bounds = array<i64: 32, 96>}, {transform_indices = @transform_2, window_bounds = array<i64: 1, 96>}, {transform_indices = @transform_3, window_bounds = array<i64: 16, 96>}]} {
    %c0 = arith.constant 0 : index
    %c0_0 = arith.constant 0 : index
    %0 = vector.load %arg2[%c0, %c0_0] : memref<16x32xbf16, #tpu.memory_space<vmem>>, vector<16x32xbf16>
    %c0_1 = arith.constant 0 : index
    %c0_2 = arith.constant 0 : index
    %1 = vector.load %arg3[%c0_1, %c0_2] : memref<32x96xbf16, #tpu.memory_space<vmem>>, vector<32x96xbf16>
    %cst = arith.constant dense<0.000000e+00> : vector<16x96xf32>
    %2 = tpu.matmul %0, %1, %cst {dimension_numbers = #tpu.dot_dimension_numbers<[1], [0], [0], [1], [0, 0, 1, 1], [], []>} : vector<16x32xbf16>, vector<32x96xbf16>, vector<16x96xf32> -> vector<16x96xf32>
    %c0_3 = arith.constant 0 : index
    %c0_4 = arith.constant 0 : index
    %3 = vector.load %arg4[%c0_3, %c0_4] : memref<1x96xf32, #tpu.memory_space<vmem>>, vector<1x96xf32>
    %4 = vector.broadcast %3 : vector<1x96xf32> to vector<16x96xf32>
    %5 = arith.addf %2, %4 : vector<16x96xf32>
    %6 = arith.truncf %5 : vector<16x96xf32> to vector<16x96xbf16>
    %c0_5 = arith.constant 0 : index
    %c0_6 = arith.constant 0 : index
    %7 = vector.load %arg5[%c0_5, %c0_6] : memref<16x96xbf16, #tpu.memory_space<vmem>>, vector<16x96xbf16>
    tpu.vector_store %arg5[%c0_5, %c0_6], %6 {strides = array<i32>} : memref<16x96xbf16, #tpu.memory_space<vmem>>, vector<16x96xbf16>,
    return
  }
  func.func @transform_0(%arg0: i32, %arg1: i32) -> (i32, i32) {
    %c0_i32 = arith.constant 0 : i32
    %c0_i32_0 = arith.constant 0 : i32
    return %arg0, %c0_i32 : i32, i32
  }
  func.func @transform_1(%arg0: i32, %arg1: i32) -> (i32, i32) {
    %c0_i32 = arith.constant 0 : i32
    %c0_i32_0 = arith.constant 0 : i32
    return %c0_i32, %arg1 : i32, i32
  }
  func.func @transform_2(%arg0: i32, %arg1: i32) -> (i32, i32) {
    %c0_i32 = arith.constant 0 : i32
    %c0_i32_0 = arith.constant 0 : i32
    return %c0_i32, %arg1 : i32, i32
  }
  func.func @transform_3(%arg0: i32, %arg1: i32) -> (i32, i32) {
    %c0_i32 = arith.constant 0 : i32
    return %arg0, %arg1 : i32, i32
  }
}

module attributes {stable_mosaic.version = 11 : i64} {
  func.func @_linear_kernel_single_k(%arg0: i32, %arg1: i32, %arg2: memref<16x32xbf16, #tpu.memory_space<vmem>>, %arg3: memref<32x32xbf16, #tpu.memory_space<vmem>>, %arg4: memref<1x32xf32, #tpu.memory_space<vmem>>, %arg5: memref<16x32xbf16, #tpu.memory_space<vmem>>) attributes {dimension_semantics = [#tpu.dimension_semantics<parallel>, #tpu.dimension_semantics<parallel>], iteration_bounds = array<i64: 1, 1>, scalar_prefetch = 0 : i64, scratch_operands = 0 : i64, tpu.core_type = #tpu.core_type<tc>, window_params = [{transform_indices = @transform_0, window_bounds = array<i64: 16, 32>}, {transform_indices = @transform_1, window_bounds = array<i64: 32, 32>}, {transform_indices = @transform_2, window_bounds = array<i64: 1, 32>}, {transform_indices = @transform_3, window_bounds = array<i64: 16, 32>}]} {
    %c0 = arith.constant 0 : index
    %c0_0 = arith.constant 0 : index
    %0 = vector.load %arg2[%c0, %c0_0] : memref<16x32xbf16, #tpu.memory_space<vmem>>, vector<16x32xbf16>
    %c0_1 = arith.constant 0 : index
    %c0_2 = arith.constant 0 : index
    %1 = vector.load %arg3[%c0_1, %c0_2] : memref<32x32xbf16, #tpu.memory_space<vmem>>, vector<32x32xbf16>
    %cst = arith.constant dense<0.000000e+00> : vector<16x32xf32>
    %2 = tpu.matmul %0, %1, %cst {dimension_numbers = #tpu.dot_dimension_numbers<[1], [0], [0], [1], [0, 0, 1, 1], [], []>} : vector<16x32xbf16>, vector<32x32xbf16>, vector<16x32xf32> -> vector<16x32xf32>
    %c0_3 = arith.constant 0 : index
    %c0_4 = arith.constant 0 : index
    %3 = vector.load %arg4[%c0_3, %c0_4] : memref<1x32xf32, #tpu.memory_space<vmem>>, vector<1x32xf32>
    %4 = vector.broadcast %3 : vector<1x32xf32> to vector<16x32xf32>
    %5 = arith.addf %2, %4 : vector<16x32xf32>
    %6 = arith.truncf %5 : vector<16x32xf32> to vector<16x32xbf16>
    %c0_5 = arith.constant 0 : index
    %c0_6 = arith.constant 0 : index
    %7 = vector.load %arg5[%c0_5, %c0_6] : memref<16x32xbf16, #tpu.memory_space<vmem>>, vector<16x32xbf16>
    tpu.vector_store %arg5[%c0_5, %c0_6], %6 {strides = array<i32>} : memref<16x32xbf16, #tpu.memory_space<vmem>>, vector<16x32xbf16>,
    return
  }
  func.func @transform_0(%arg0: i32, %arg1: i32) -> (i32, i32) {
    %c0_i32 = arith.constant 0 : i32
    %c0_i32_0 = arith.constant 0 : i32
    return %arg0, %c0_i32 : i32, i32
  }
  func.func @transform_1(%arg0: i32, %arg1: i32) -> (i32, i32) {
    %c0_i32 = arith.constant 0 : i32
    %c0_i32_0 = arith.constant 0 : i32
    return %c0_i32, %arg1 : i32, i32
  }
  func.func @transform_2(%arg0: i32, %arg1: i32) -> (i32, i32) {
    %c0_i32 = arith.constant 0 : i32
    %c0_i32_0 = arith.constant 0 : i32
    return %c0_i32, %arg1 : i32, i32
  }
  func.func @transform_3(%arg0: i32, %arg1: i32) -> (i32, i32) {
    %c0_i32 = arith.constant 0 : i32
    return %arg0, %arg1 : i32, i32
  }
}

module attributes {stable_mosaic.version = 11 : i64} {
  func.func @_attention_kernel(%arg0: i32, %arg1: memref<1x8x96xbf16, #tpu.memory_space<vmem>>, %arg2: memref<1x1x8xf32, #tpu.memory_space<vmem>>, %arg3: memref<1x8x32xbf16, #tpu.memory_space<vmem>>, %arg4: memref<8x32xf32, #tpu.memory_space<vmem>>) attributes {dimension_semantics = [#tpu.dimension_semantics<parallel>], iteration_bounds = array<i64: 2>, scalar_prefetch = 0 : i64, scratch_operands = 1 : i64, tpu.core_type = #tpu.core_type<tc>, window_params = [{transform_indices = @transform_0, window_bounds = array<i64: 1, 8, 96>}, {transform_indices = @transform_1, window_bounds = array<i64: 1, 1, 8>}, {transform_indices = @transform_2, window_bounds = array<i64: 1, 8, 32>}]} {
    %c0 = arith.constant 0 : index
    %c0_0 = arith.constant 0 : index
    %c0_1 = arith.constant 0 : index
    %0 = vector.load %arg2[%c0, %c0_0, %c0_1] : memref<1x1x8xf32, #tpu.memory_space<vmem>>, vector<1x1x8xf32>
    %1 = vector.shape_cast %0 : vector<1x1x8xf32> to vector<1x8xf32>
    %c0_2 = arith.constant 0 : index
    %c0_3 = arith.constant 0 : index
    %c0_4 = arith.constant 0 : index
    %2 = vector.load %arg1[%c0_2, %c0_3, %c0_4] : memref<1x8x96xbf16, #tpu.memory_space<vmem>>, vector<1x8x32xbf16>
    %3 = vector.shape_cast %2 : vector<1x8x32xbf16> to vector<8x32xbf16>
    %c0_5 = arith.constant 0 : index
    %c0_6 = arith.constant 0 : index
    %c32 = arith.constant 32 : index
    %4 = vector.load %arg1[%c0_5, %c0_6, %c32] : memref<1x8x96xbf16, #tpu.memory_space<vmem>>, vector<1x8x32xbf16>
    %5 = vector.shape_cast %4 : vector<1x8x32xbf16> to vector<8x32xbf16>
    %c0_7 = arith.constant 0 : index
    %c0_8 = arith.constant 0 : index
    %c64 = arith.constant 64 : index
    %6 = vector.load %arg1[%c0_7, %c0_8, %c64] : memref<1x8x96xbf16, #tpu.memory_space<vmem>>, vector<1x8x32xbf16>
    %7 = vector.shape_cast %6 : vector<1x8x32xbf16> to vector<8x32xbf16>
    %8 = vector.extract_strided_slice %3 {offsets = [0, 0], sizes = [8, 8], strides = [1, 1]} : vector<8x32xbf16> to vector<8x8xbf16>
    %9 = vector.extract_strided_slice %5 {offsets = [0, 0], sizes = [8, 8], strides = [1, 1]} : vector<8x32xbf16> to vector<8x8xbf16>
    %10 = vector.extract_strided_slice %7 {offsets = [0, 0], sizes = [8, 8], strides = [1, 1]} : vector<8x32xbf16> to vector<8x8xbf16>
    "tpu.trace_start"() <{level = 10 : i32, message = "qd,kd->qk"}> : () -> ()
    %cst = arith.constant dense<0.000000e+00> : vector<8x8xf32>
    %11 = tpu.matmul %8, %9, %cst {dimension_numbers = #tpu.dot_dimension_numbers<[1], [1], [0], [0], [0, 0, 1, 0], [], []>} : vector<8x8xbf16>, vector<8x8xbf16>, vector<8x8xf32> -> vector<8x8xf32>
    "tpu.trace_stop"() : () -> ()
    %12 = vector.broadcast %1 : vector<1x8xf32> to vector<8x8xf32>
    %13 = arith.addf %11, %12 : vector<8x8xf32>
    %cst_9 = arith.constant dense<0xFF800000> : vector<8xf32>
    %14 = vector.multi_reduction <maximumf>, %13, %cst_9 [1] : vector<8x8xf32> to vector<8xf32>
    %15 = vector.shape_cast %14 : vector<8xf32> to vector<8x1xf32>
    %16 = vector.broadcast %15 : vector<8x1xf32> to vector<8x8xf32>
    %17 = arith.subf %13, %16 : vector<8x8xf32>
    %18 = math.exp %17 : vector<8x8xf32>
    %cst_10 = arith.constant dense<0.000000e+00> : vector<8xf32>
    %19 = vector.multi_reduction <add>, %18, %cst_10 [1] : vector<8x8xf32> to vector<8xf32>
    %20 = vector.shape_cast %19 : vector<8xf32> to vector<8x1xf32>
    %21 = tpu.reciprocal %20 {approx = true} : vector<8x1xf32> -> vector<8x1xf32>
    %22 = vector.broadcast %21 : vector<8x1xf32> to vector<8x8xf32>
    %23 = arith.mulf %18, %22 : vector<8x8xf32>
    %24 = arith.truncf %23 : vector<8x8xf32> to vector<8x8xbf16>
    %cst_11 = arith.constant dense<0.000000e+00> : vector<8x8xf32>
    %25 = tpu.matmul %24, %10, %cst_11 {dimension_numbers = #tpu.dot_dimension_numbers<[1], [0], [0], [1], [0, 0, 1, 1], [], []>} : vector<8x8xbf16>, vector<8x8xbf16>, vector<8x8xf32> -> vector<8x8xf32>
    %c0_12 = arith.constant 0 : index
    %c0_13 = arith.constant 0 : index
    %26 = vector.load %arg4[%c0_12, %c0_13] : memref<8x32xf32, #tpu.memory_space<vmem>>, vector<8x8xf32>
    tpu.vector_store %arg4[%c0_12, %c0_13], %25 {strides = array<i32>} : memref<8x32xf32, #tpu.memory_space<vmem>>, vector<8x8xf32>,
    %27 = vector.extract_strided_slice %3 {offsets = [0, 8], sizes = [8, 8], strides = [1, 1]} : vector<8x32xbf16> to vector<8x8xbf16>
    %28 = vector.extract_strided_slice %5 {offsets = [0, 8], sizes = [8, 8], strides = [1, 1]} : vector<8x32xbf16> to vector<8x8xbf16>
    %29 = vector.extract_strided_slice %7 {offsets = [0, 8], sizes = [8, 8], strides = [1, 1]} : vector<8x32xbf16> to vector<8x8xbf16>
    "tpu.trace_start"() <{level = 10 : i32, message = "qd,kd->qk"}> : () -> ()
    %cst_14 = arith.constant dense<0.000000e+00> : vector<8x8xf32>
    %30 = tpu.matmul %27, %28, %cst_14 {dimension_numbers = #tpu.dot_dimension_numbers<[1], [1], [0], [0], [0, 0, 1, 0], [], []>} : vector<8x8xbf16>, vector<8x8xbf16>, vector<8x8xf32> -> vector<8x8xf32>
    "tpu.trace_stop"() : () -> ()
    %31 = vector.broadcast %1 : vector<1x8xf32> to vector<8x8xf32>
    %32 = arith.addf %30, %31 : vector<8x8xf32>
    %cst_15 = arith.constant dense<0xFF800000> : vector<8xf32>
    %33 = vector.multi_reduction <maximumf>, %32, %cst_15 [1] : vector<8x8xf32> to vector<8xf32>
    %34 = vector.shape_cast %33 : vector<8xf32> to vector<8x1xf32>
    %35 = vector.broadcast %34 : vector<8x1xf32> to vector<8x8xf32>
    %36 = arith.subf %32, %35 : vector<8x8xf32>
    %37 = math.exp %36 : vector<8x8xf32>
    %cst_16 = arith.constant dense<0.000000e+00> : vector<8xf32>
    %38 = vector.multi_reduction <add>, %37, %cst_16 [1] : vector<8x8xf32> to vector<8xf32>
    %39 = vector.shape_cast %38 : vector<8xf32> to vector<8x1xf32>
    %40 = tpu.reciprocal %39 {approx = true} : vector<8x1xf32> -> vector<8x1xf32>
    %41 = vector.broadcast %40 : vector<8x1xf32> to vector<8x8xf32>
    %42 = arith.mulf %37, %41 : vector<8x8xf32>
    %43 = arith.truncf %42 : vector<8x8xf32> to vector<8x8xbf16>
    %cst_17 = arith.constant dense<0.000000e+00> : vector<8x8xf32>
    %44 = tpu.matmul %43, %29, %cst_17 {dimension_numbers = #tpu.dot_dimension_numbers<[1], [0], [0], [1], [0, 0, 1, 1], [], []>} : vector<8x8xbf16>, vector<8x8xbf16>, vector<8x8xf32> -> vector<8x8xf32>
    %c0_18 = arith.constant 0 : index
    %c8 = arith.constant 8 : index
    %45 = vector.load %arg4[%c0_18, %c8] : memref<8x32xf32, #tpu.memory_space<vmem>>, vector<8x8xf32>
    tpu.vector_store %arg4[%c0_18, %c8], %44 {strides = array<i32>} : memref<8x32xf32, #tpu.memory_space<vmem>>, vector<8x8xf32>,
    %46 = vector.extract_strided_slice %3 {offsets = [0, 16], sizes = [8, 8], strides = [1, 1]} : vector<8x32xbf16> to vector<8x8xbf16>
    %47 = vector.extract_strided_slice %5 {offsets = [0, 16], sizes = [8, 8], strides = [1, 1]} : vector<8x32xbf16> to vector<8x8xbf16>
    %48 = vector.extract_strided_slice %7 {offsets = [0, 16], sizes = [8, 8], strides = [1, 1]} : vector<8x32xbf16> to vector<8x8xbf16>
    "tpu.trace_start"() <{level = 10 : i32, message = "qd,kd->qk"}> : () -> ()
    %cst_19 = arith.constant dense<0.000000e+00> : vector<8x8xf32>
    %49 = tpu.matmul %46, %47, %cst_19 {dimension_numbers = #tpu.dot_dimension_numbers<[1], [1], [0], [0], [0, 0, 1, 0], [], []>} : vector<8x8xbf16>, vector<8x8xbf16>, vector<8x8xf32> -> vector<8x8xf32>
    "tpu.trace_stop"() : () -> ()
    %50 = vector.broadcast %1 : vector<1x8xf32> to vector<8x8xf32>
    %51 = arith.addf %49, %50 : vector<8x8xf32>
    %cst_20 = arith.constant dense<0xFF800000> : vector<8xf32>
    %52 = vector.multi_reduction <maximumf>, %51, %cst_20 [1] : vector<8x8xf32> to vector<8xf32>
    %53 = vector.shape_cast %52 : vector<8xf32> to vector<8x1xf32>
    %54 = vector.broadcast %53 : vector<8x1xf32> to vector<8x8xf32>
    %55 = arith.subf %51, %54 : vector<8x8xf32>
    %56 = math.exp %55 : vector<8x8xf32>
    %cst_21 = arith.constant dense<0.000000e+00> : vector<8xf32>
    %57 = vector.multi_reduction <add>, %56, %cst_21 [1] : vector<8x8xf32> to vector<8xf32>
    %58 = vector.shape_cast %57 : vector<8xf32> to vector<8x1xf32>
    %59 = tpu.reciprocal %58 {approx = true} : vector<8x1xf32> -> vector<8x1xf32>
    %60 = vector.broadcast %59 : vector<8x1xf32> to vector<8x8xf32>
    %61 = arith.mulf %56, %60 : vector<8x8xf32>
    %62 = arith.truncf %61 : vector<8x8xf32> to vector<8x8xbf16>
    %cst_22 = arith.constant dense<0.000000e+00> : vector<8x8xf32>
    %63 = tpu.matmul %62, %48, %cst_22 {dimension_numbers = #tpu.dot_dimension_numbers<[1], [0], [0], [1], [0, 0, 1, 1], [], []>} : vector<8x8xbf16>, vector<8x8xbf16>, vector<8x8xf32> -> vector<8x8xf32>
    %c0_23 = arith.constant 0 : index
    %c16 = arith.constant 16 : index
    %64 = vector.load %arg4[%c0_23, %c16] : memref<8x32xf32, #tpu.memory_space<vmem>>, vector<8x8xf32>
    tpu.vector_store %arg4[%c0_23, %c16], %63 {strides = array<i32>} : memref<8x32xf32, #tpu.memory_space<vmem>>, vector<8x8xf32>,
    %65 = vector.extract_strided_slice %3 {offsets = [0, 24], sizes = [8, 8], strides = [1, 1]} : vector<8x32xbf16> to vector<8x8xbf16>
    %66 = vector.extract_strided_slice %5 {offsets = [0, 24], sizes = [8, 8], strides = [1, 1]} : vector<8x32xbf16> to vector<8x8xbf16>
    %67 = vector.extract_strided_slice %7 {offsets = [0, 24], sizes = [8, 8], strides = [1, 1]} : vector<8x32xbf16> to vector<8x8xbf16>
    "tpu.trace_start"() <{level = 10 : i32, message = "qd,kd->qk"}> : () -> ()
    %cst_24 = arith.constant dense<0.000000e+00> : vector<8x8xf32>
    %68 = tpu.matmul %65, %66, %cst_24 {dimension_numbers = #tpu.dot_dimension_numbers<[1], [1], [0], [0], [0, 0, 1, 0], [], []>} : vector<8x8xbf16>, vector<8x8xbf16>, vector<8x8xf32> -> vector<8x8xf32>
    "tpu.trace_stop"() : () -> ()
    %69 = vector.broadcast %1 : vector<1x8xf32> to vector<8x8xf32>
    %70 = arith.addf %68, %69 : vector<8x8xf32>
    %cst_25 = arith.constant dense<0xFF800000> : vector<8xf32>
    %71 = vector.multi_reduction <maximumf>, %70, %cst_25 [1] : vector<8x8xf32> to vector<8xf32>
    %72 = vector.shape_cast %71 : vector<8xf32> to vector<8x1xf32>
    %73 = vector.broadcast %72 : vector<8x1xf32> to vector<8x8xf32>
    %74 = arith.subf %70, %73 : vector<8x8xf32>
    %75 = math.exp %74 : vector<8x8xf32>
    %cst_26 = arith.constant dense<0.000000e+00> : vector<8xf32>
    %76 = vector.multi_reduction <add>, %75, %cst_26 [1] : vector<8x8xf32> to vector<8xf32>
    %77 = vector.shape_cast %76 : vector<8xf32> to vector<8x1xf32>
    %78 = tpu.reciprocal %77 {approx = true} : vector<8x1xf32> -> vector<8x1xf32>
    %79 = vector.broadcast %78 : vector<8x1xf32> to vector<8x8xf32>
    %80 = arith.mulf %75, %79 : vector<8x8xf32>
    %81 = arith.truncf %80 : vector<8x8xf32> to vector<8x8xbf16>
    %cst_27 = arith.constant dense<0.000000e+00> : vector<8x8xf32>
    %82 = tpu.matmul %81, %67, %cst_27 {dimension_numbers = #tpu.dot_dimension_numbers<[1], [0], [0], [1], [0, 0, 1, 1], [], []>} : vector<8x8xbf16>, vector<8x8xbf16>, vector<8x8xf32> -> vector<8x8xf32>
    %c0_28 = arith.constant 0 : index
    %c24 = arith.constant 24 : index
    %83 = vector.load %arg4[%c0_28, %c24] : memref<8x32xf32, #tpu.memory_space<vmem>>, vector<8x8xf32>
    tpu.vector_store %arg4[%c0_28, %c24], %82 {strides = array<i32>} : memref<8x32xf32, #tpu.memory_space<vmem>>, vector<8x8xf32>,
    %c0_29 = arith.constant 0 : index
    %c0_30 = arith.constant 0 : index
    %84 = vector.load %arg4[%c0_29, %c0_30] : memref<8x32xf32, #tpu.memory_space<vmem>>, vector<8x32xf32>
    %85 = arith.truncf %84 : vector<8x32xf32> to vector<8x32xbf16>
    %c0_31 = arith.constant 0 : index
    %c0_32 = arith.constant 0 : index
    %c0_33 = arith.constant 0 : index
    %86 = vector.load %arg3[%c0_31, %c0_32, %c0_33] : memref<1x8x32xbf16, #tpu.memory_space<vmem>>, vector<1x8x32xbf16>
    %87 = vector.shape_cast %86 : vector<1x8x32xbf16> to vector<8x32xbf16>
    %88 = vector.shape_cast %85 : vector<8x32xbf16> to vector<1x8x32xbf16>
    tpu.vector_store %arg3[%c0_31, %c0_32, %c0_33], %88 {strides = array<i32>} : memref<1x8x32xbf16, #tpu.memory_space<vmem>>, vector<1x8x32xbf16>,
    return
  }
  func.func @transform_0(%arg0: i32) -> (i32, i32, i32) {
    %c0_i32 = arith.constant 0 : i32
    %c0_i32_0 = arith.constant 0 : i32
    %c0_i32_1 = arith.constant 0 : i32
    return %arg0, %c0_i32, %c0_i32_0 : i32, i32, i32
  }
  func.func @transform_1(%arg0: i32) -> (i32, i32, i32) {
    %c0_i32 = arith.constant 0 : i32
    %c0_i32_0 = arith.constant 0 : i32
    %c0_i32_1 = arith.constant 0 : i32
    return %arg0, %c0_i32, %c0_i32_0 : i32, i32, i32
  }
  func.func @transform_2(%arg0: i32) -> (i32, i32, i32) {
    %c0_i32 = arith.constant 0 : i32
    %c0_i32_0 = arith.constant 0 : i32
    %c0_i32_1 = arith.constant 0 : i32
    return %arg0, %c0_i32, %c0_i32_0 : i32, i32, i32
  }
}

module attributes {stable_mosaic.version = 11 : i64} {
  func.func @_layernorm_kernel(%arg0: i32, %arg1: memref<16x32xbf16, #tpu.memory_space<vmem>>, %arg2: memref<16x32xbf16, #tpu.memory_space<vmem>>, %arg3: memref<1x32xf32, #tpu.memory_space<vmem>>, %arg4: memref<1x32xf32, #tpu.memory_space<vmem>>, %arg5: memref<16x32xbf16, #tpu.memory_space<vmem>>) attributes {dimension_semantics = [#tpu.dimension_semantics<parallel>], iteration_bounds = array<i64: 1>, scalar_prefetch = 0 : i64, scratch_operands = 0 : i64, tpu.core_type = #tpu.core_type<tc>, window_params = [{transform_indices = @transform_0, window_bounds = array<i64: 16, 32>}, {transform_indices = @transform_1, window_bounds = array<i64: 16, 32>}, {pipeline_mode = #tpu.pipeline_mode<synchronous>, transform_indices = @transform_2, window_bounds = array<i64: 1, 32>}, {pipeline_mode = #tpu.pipeline_mode<synchronous>, transform_indices = @transform_3, window_bounds = array<i64: 1, 32>}, {transform_indices = @transform_4, window_bounds = array<i64: 16, 32>}]} {
    %c0 = arith.constant 0 : index
    %c0_0 = arith.constant 0 : index
    %0 = vector.load %arg1[%c0, %c0_0] : memref<16x32xbf16, #tpu.memory_space<vmem>>, vector<16x32xbf16>
    %1 = arith.extf %0 : vector<16x32xbf16> to vector<16x32xf32>
    %c0_1 = arith.constant 0 : index
    %c0_2 = arith.constant 0 : index
    %2 = vector.load %arg2[%c0_1, %c0_2] : memref<16x32xbf16, #tpu.memory_space<vmem>>, vector<16x32xbf16>
    %3 = arith.extf %2 : vector<16x32xbf16> to vector<16x32xf32>
    %4 = arith.addf %1, %3 : vector<16x32xf32>
    %cst = arith.constant dense<0.000000e+00> : vector<16xf32>
    %5 = vector.multi_reduction <add>, %4, %cst [1] : vector<16x32xf32> to vector<16xf32>
    %6 = vector.shape_cast %5 : vector<16xf32> to vector<16x1xf32>
    %cst_3 = arith.constant 3.200000e+01 : f32
    %7 = vector.broadcast %cst_3 : f32 to vector<16x1xf32>
    %8 = arith.divf %6, %7 : vector<16x1xf32>
    %9 = vector.broadcast %8 : vector<16x1xf32> to vector<16x32xf32>
    %10 = arith.subf %4, %9 : vector<16x32xf32>
    %11 = arith.mulf %10, %10 : vector<16x32xf32>
    %cst_4 = arith.constant dense<0.000000e+00> : vector<16xf32>
    %12 = vector.multi_reduction <add>, %11, %cst_4 [1] : vector<16x32xf32> to vector<16xf32>
    %13 = vector.shape_cast %12 : vector<16xf32> to vector<16x1xf32>
    %cst_5 = arith.constant 3.200000e+01 : f32
    %14 = vector.broadcast %cst_5 : f32 to vector<16x1xf32>
    %15 = arith.divf %13, %14 : vector<16x1xf32>
    %cst_6 = arith.constant 9.99999996E-13 : f32
    %16 = vector.broadcast %cst_6 : f32 to vector<16x1xf32>
    %17 = arith.addf %15, %16 : vector<16x1xf32>
    %18 = math.rsqrt %17 : vector<16x1xf32>
    %19 = vector.broadcast %18 : vector<16x1xf32> to vector<16x32xf32>
    %20 = arith.mulf %10, %19 : vector<16x32xf32>
    %c0_7 = arith.constant 0 : index
    %c0_8 = arith.constant 0 : index
    %21 = vector.load %arg3[%c0_7, %c0_8] : memref<1x32xf32, #tpu.memory_space<vmem>>, vector<1x32xf32>
    %22 = vector.broadcast %21 : vector<1x32xf32> to vector<16x32xf32>
    %23 = arith.mulf %20, %22 : vector<16x32xf32>
    %c0_9 = arith.constant 0 : index
    %c0_10 = arith.constant 0 : index
    %24 = vector.load %arg4[%c0_9, %c0_10] : memref<1x32xf32, #tpu.memory_space<vmem>>, vector<1x32xf32>
    %25 = vector.broadcast %24 : vector<1x32xf32> to vector<16x32xf32>
    %26 = arith.addf %23, %25 : vector<16x32xf32>
    %27 = arith.truncf %26 : vector<16x32xf32> to vector<16x32xbf16>
    %c0_11 = arith.constant 0 : index
    %c0_12 = arith.constant 0 : index
    %28 = vector.load %arg5[%c0_11, %c0_12] : memref<16x32xbf16, #tpu.memory_space<vmem>>, vector<16x32xbf16>
    tpu.vector_store %arg5[%c0_11, %c0_12], %27 {strides = array<i32>} : memref<16x32xbf16, #tpu.memory_space<vmem>>, vector<16x32xbf16>,
    return
  }
  func.func @transform_0(%arg0: i32) -> (i32, i32) {
    %c0_i32 = arith.constant 0 : i32
    %c0_i32_0 = arith.constant 0 : i32
    return %arg0, %c0_i32 : i32, i32
  }
  func.func @transform_1(%arg0: i32) -> (i32, i32) {
    %c0_i32 = arith.constant 0 : i32
    %c0_i32_0 = arith.constant 0 : i32
    return %arg0, %c0_i32 : i32, i32
  }
  func.func @transform_2(%arg0: i32) -> (i32, i32) {
    %c0_i32 = arith.constant 0 : i32
    %c0_i32_0 = arith.constant 0 : i32
    %c0_i32_1 = arith.constant 0 : i32
    return %c0_i32, %c0_i32_0 : i32, i32
  }
  func.func @transform_3(%arg0: i32) -> (i32, i32) {
    %c0_i32 = arith.constant 0 : i32
    %c0_i32_0 = arith.constant 0 : i32
    %c0_i32_1 = arith.constant 0 : i32
    return %c0_i32, %c0_i32_0 : i32, i32
  }
  func.func @transform_4(%arg0: i32) -> (i32, i32) {
    %c0_i32 = arith.constant 0 : i32
    %c0_i32_0 = arith.constant 0 : i32
    return %arg0, %c0_i32 : i32, i32
  }
}

module attributes {stable_mosaic.version = 11 : i64} {
  func.func @_linear_kernel_single_k(%arg0: i32, %arg1: i32, %arg2: memref<16x32xbf16, #tpu.memory_space<vmem>>, %arg3: memref<32x64xbf16, #tpu.memory_space<vmem>>, %arg4: memref<1x64xf32, #tpu.memory_space<vmem>>, %arg5: memref<16x64xbf16, #tpu.memory_space<vmem>>) attributes {dimension_semantics = [#tpu.dimension_semantics<parallel>, #tpu.dimension_semantics<parallel>], iteration_bounds = array<i64: 1, 1>, scalar_prefetch = 0 : i64, scratch_operands = 0 : i64, tpu.core_type = #tpu.core_type<tc>, window_params = [{transform_indices = @transform_0, window_bounds = array<i64: 16, 32>}, {transform_indices = @transform_1, window_bounds = array<i64: 32, 64>}, {transform_indices = @transform_2, window_bounds = array<i64: 1, 64>}, {transform_indices = @transform_3, window_bounds = array<i64: 16, 64>}]} {
    %c0 = arith.constant 0 : index
    %c0_0 = arith.constant 0 : index
    %0 = vector.load %arg2[%c0, %c0_0] : memref<16x32xbf16, #tpu.memory_space<vmem>>, vector<16x32xbf16>
    %c0_1 = arith.constant 0 : index
    %c0_2 = arith.constant 0 : index
    %1 = vector.load %arg3[%c0_1, %c0_2] : memref<32x64xbf16, #tpu.memory_space<vmem>>, vector<32x64xbf16>
    %cst = arith.constant dense<0.000000e+00> : vector<16x64xf32>
    %2 = tpu.matmul %0, %1, %cst {dimension_numbers = #tpu.dot_dimension_numbers<[1], [0], [0], [1], [0, 0, 1, 1], [], []>} : vector<16x32xbf16>, vector<32x64xbf16>, vector<16x64xf32> -> vector<16x64xf32>
    %c0_3 = arith.constant 0 : index
    %c0_4 = arith.constant 0 : index
    %3 = vector.load %arg4[%c0_3, %c0_4] : memref<1x64xf32, #tpu.memory_space<vmem>>, vector<1x64xf32>
    %4 = vector.broadcast %3 : vector<1x64xf32> to vector<16x64xf32>
    %5 = arith.addf %2, %4 : vector<16x64xf32>
    %6 = arith.mulf %5, %5 : vector<16x64xf32>
    %7 = arith.mulf %5, %6 : vector<16x64xf32>
    %cst_5 = arith.constant 4.471500e-02 : f32
    %8 = vector.broadcast %cst_5 : f32 to vector<16x64xf32>
    %9 = arith.mulf %8, %7 : vector<16x64xf32>
    %10 = arith.addf %5, %9 : vector<16x64xf32>
    %cst_6 = arith.constant 0.797884583 : f32
    %11 = vector.broadcast %cst_6 : f32 to vector<16x64xf32>
    %12 = arith.mulf %11, %10 : vector<16x64xf32>
    %13 = math.tanh %12 : vector<16x64xf32>
    %cst_7 = arith.constant 1.000000e+00 : f32
    %14 = vector.broadcast %cst_7 : f32 to vector<16x64xf32>
    %15 = arith.addf %14, %13 : vector<16x64xf32>
    %cst_8 = arith.constant 5.000000e-01 : f32
    %16 = vector.broadcast %cst_8 : f32 to vector<16x64xf32>
    %17 = arith.mulf %16, %15 : vector<16x64xf32>
    %18 = arith.mulf %5, %17 : vector<16x64xf32>
    %19 = arith.truncf %18 : vector<16x64xf32> to vector<16x64xbf16>
    %c0_9 = arith.constant 0 : index
    %c0_10 = arith.constant 0 : index
    %20 = vector.load %arg5[%c0_9, %c0_10] : memref<16x64xbf16, #tpu.memory_space<vmem>>, vector<16x64xbf16>
    tpu.vector_store %arg5[%c0_9, %c0_10], %19 {strides = array<i32>} : memref<16x64xbf16, #tpu.memory_space<vmem>>, vector<16x64xbf16>,
    return
  }
  func.func @transform_0(%arg0: i32, %arg1: i32) -> (i32, i32) {
    %c0_i32 = arith.constant 0 : i32
    %c0_i32_0 = arith.constant 0 : i32
    return %arg0, %c0_i32 : i32, i32
  }
  func.func @transform_1(%arg0: i32, %arg1: i32) -> (i32, i32) {
    %c0_i32 = arith.constant 0 : i32
    %c0_i32_0 = arith.constant 0 : i32
    return %c0_i32, %arg1 : i32, i32
  }
  func.func @transform_2(%arg0: i32, %arg1: i32) -> (i32, i32) {
    %c0_i32 = arith.constant 0 : i32
    %c0_i32_0 = arith.constant 0 : i32
    return %c0_i32, %arg1 : i32, i32
  }
  func.func @transform_3(%arg0: i32, %arg1: i32) -> (i32, i32) {
    %c0_i32 = arith.constant 0 : i32
    return %arg0, %arg1 : i32, i32
  }
}

module attributes {stable_mosaic.version = 11 : i64} {
  func.func @_linear_kernel_single_k(%arg0: i32, %arg1: i32, %arg2: memref<2x32xbf16, #tpu.memory_space<vmem>>, %arg3: memref<32x128xbf16, #tpu.memory_space<vmem>>, %arg4: memref<1x128xf32, #tpu.memory_space<vmem>>, %arg5: memref<2x128xf32, #tpu.memory_space<vmem>>) attributes {dimension_semantics = [#tpu.dimension_semantics<parallel>, #tpu.dimension_semantics<parallel>], iteration_bounds = array<i64: 1, 1>, scalar_prefetch = 0 : i64, scratch_operands = 0 : i64, tpu.core_type = #tpu.core_type<tc>, window_params = [{transform_indices = @transform_0, window_bounds = array<i64: 2, 32>}, {transform_indices = @transform_1, window_bounds = array<i64: 32, 128>}, {transform_indices = @transform_2, window_bounds = array<i64: 1, 128>}, {transform_indices = @transform_3, window_bounds = array<i64: 2, 128>}]} {
    %c0 = arith.constant 0 : index
    %c0_0 = arith.constant 0 : index
    %0 = vector.load %arg2[%c0, %c0_0] : memref<2x32xbf16, #tpu.memory_space<vmem>>, vector<2x32xbf16>
    %c0_1 = arith.constant 0 : index
    %c0_2 = arith.constant 0 : index
    %1 = vector.load %arg3[%c0_1, %c0_2] : memref<32x128xbf16, #tpu.memory_space<vmem>>, vector<32x128xbf16>
    %cst = arith.constant dense<0.000000e+00> : vector<2x128xf32>
    %2 = tpu.matmul %0, %1, %cst {dimension_numbers = #tpu.dot_dimension_numbers<[1], [0], [0], [1], [0, 0, 1, 1], [], []>} : vector<2x32xbf16>, vector<32x128xbf16>, vector<2x128xf32> -> vector<2x128xf32>
    %c0_3 = arith.constant 0 : index
    %c0_4 = arith.constant 0 : index
    %3 = vector.load %arg4[%c0_3, %c0_4] : memref<1x128xf32, #tpu.memory_space<vmem>>, vector<1x128xf32>
    %4 = vector.broadcast %3 : vector<1x128xf32> to vector<2x128xf32>
    %5 = arith.addf %2, %4 : vector<2x128xf32>
    %c0_5 = arith.constant 0 : index
    %c0_6 = arith.constant 0 : index
    %6 = vector.load %arg5[%c0_5, %c0_6] : memref<2x128xf32, #tpu.memory_space<vmem>>, vector<2x128xf32>
    tpu.vector_store %arg5[%c0_5, %c0_6], %5 {strides = array<i32>} : memref<2x128xf32, #tpu.memory_space<vmem>>, vector<2x128xf32>,
    return
  }
  func.func @transform_0(%arg0: i32, %arg1: i32) -> (i32, i32) {
    %c0_i32 = arith.constant 0 : i32
    %c0_i32_0 = arith.constant 0 : i32
    return %arg0, %c0_i32 : i32, i32
  }
  func.func @transform_1(%arg0: i32, %arg1: i32) -> (i32, i32) {
    %c0_i32 = arith.constant 0 : i32
    %c0_i32_0 = arith.constant 0 : i32
    return %c0_i32, %arg1 : i32, i32
  }
  func.func @transform_2(%arg0: i32, %arg1: i32) -> (i32, i32) {
    %c0_i32 = arith.constant 0 : i32
    %c0_i32_0 = arith.constant 0 : i32
    return %c0_i32, %arg1 : i32, i32
  }
  func.func @transform_3(%arg0: i32, %arg1: i32) -> (i32, i32) {
    %c0_i32 = arith.constant 0 : i32
    return %arg0, %arg1 : i32, i32
  }
}

module attributes {stable_mosaic.version = 11 : i64} {
  func.func @_linear_kernel_single_k(%arg0: i32, %arg1: i32, %arg2: memref<16x64xbf16, #tpu.memory_space<vmem>>, %arg3: memref<64x32xbf16, #tpu.memory_space<vmem>>, %arg4: memref<1x32xf32, #tpu.memory_space<vmem>>, %arg5: memref<16x32xbf16, #tpu.memory_space<vmem>>) attributes {dimension_semantics = [#tpu.dimension_semantics<parallel>, #tpu.dimension_semantics<parallel>], iteration_bounds = array<i64: 1, 1>, scalar_prefetch = 0 : i64, scratch_operands = 0 : i64, tpu.core_type = #tpu.core_type<tc>, window_params = [{transform_indices = @transform_0, window_bounds = array<i64: 16, 64>}, {transform_indices = @transform_1, window_bounds = array<i64: 64, 32>}, {transform_indices = @transform_2, window_bounds = array<i64: 1, 32>}, {transform_indices = @transform_3, window_bounds = array<i64: 16, 32>}]} {
    %c0 = arith.constant 0 : index
    %c0_0 = arith.constant 0 : index
    %0 = vector.load %arg2[%c0, %c0_0] : memref<16x64xbf16, #tpu.memory_space<vmem>>, vector<16x64xbf16>
    %c0_1 = arith.constant 0 : index
    %c0_2 = arith.constant 0 : index
    %1 = vector.load %arg3[%c0_1, %c0_2] : memref<64x32xbf16, #tpu.memory_space<vmem>>, vector<64x32xbf16>
    %cst = arith.constant dense<0.000000e+00> : vector<16x32xf32>
    %2 = tpu.matmul %0, %1, %cst {dimension_numbers = #tpu.dot_dimension_numbers<[1], [0], [0], [1], [0, 0, 1, 1], [], []>} : vector<16x64xbf16>, vector<64x32xbf16>, vector<16x32xf32> -> vector<16x32xf32>
    %c0_3 = arith.constant 0 : index
    %c0_4 = arith.constant 0 : index
    %3 = vector.load %arg4[%c0_3, %c0_4] : memref<1x32xf32, #tpu.memory_space<vmem>>, vector<1x32xf32>
    %4 = vector.broadcast %3 : vector<1x32xf32> to vector<16x32xf32>
    %5 = arith.addf %2, %4 : vector<16x32xf32>
    %6 = arith.truncf %5 : vector<16x32xf32> to vector<16x32xbf16>
    %c0_5 = arith.constant 0 : index
    %c0_6 = arith.constant 0 : index
    %7 = vector.load %arg5[%c0_5, %c0_6] : memref<16x32xbf16, #tpu.memory_space<vmem>>, vector<16x32xbf16>
    tpu.vector_store %arg5[%c0_5, %c0_6], %6 {strides = array<i32>} : memref<16x32xbf16, #tpu.memory_space<vmem>>, vector<16x32xbf16>,
    return
  }
  func.func @transform_0(%arg0: i32, %arg1: i32) -> (i32, i32) {
    %c0_i32 = arith.constant 0 : i32
    %c0_i32_0 = arith.constant 0 : i32
    return %arg0, %c0_i32 : i32, i32
  }
  func.func @transform_1(%arg0: i32, %arg1: i32) -> (i32, i32) {
    %c0_i32 = arith.constant 0 : i32
    %c0_i32_0 = arith.constant 0 : i32
    return %c0_i32, %arg1 : i32, i32
  }
  func.func @transform_2(%arg0: i32, %arg1: i32) -> (i32, i32) {
    %c0_i32 = arith.constant 0 : i32
    %c0_i32_0 = arith.constant 0 : i32
    return %c0_i32, %arg1 : i32, i32
  }
  func.func @transform_3(%arg0: i32, %arg1: i32) -> (i32, i32) {
    %c0_i32 = arith.constant 0 : i32
    return %arg0, %arg1 : i32, i32
  }
}

</mosaic_0001>

<bundles_post_ra>
// kernel: sentiment_classifier_forward.12
= control target key start
LH: loop header
LB: loop body
LE: loop exit
PB: predicated region body
PF: predicated region fallthrough
CT: control target
= control target key end

     0   :  { %vm42_vm0 = vcmask 261120   ;;  %vm62_vm1 = vcmask 257024   ;;  %s124_s1 = inlined_call_operand.vmem [shape: bf16[32,32], index: 1, kind: input, shape index: {}]   ;;  %s125_s2 = inlined_call_operand.vmem [shape: f32[1,32], index: 2, kind: input, shape index: {}]   ;;  %s126_s0 = inlined_call_operand.vmem [shape: bf16[16,32], index: 0, kind: input, shape index: {}]   ;;  %s127_s3 = inlined_call_operand.vmem [shape: bf16[16,32], index: 3, kind: output, shape index: {}]  }
   0x1   :  { %v84_v0 = vld [vmem:[%s124_s1 + $0x8] sm:$0xff]  ;;  %v83_v1 = vld [vmem:[%s124_s1] sm:$0xff] }
   0x2   :  { %52 = vmatpush.bf16.msra.mxu0 %v84_v0  ;;  %v82_v2 = vld [vmem:[%s126_s0] sm:$0xff] }
   0x3   :  { %v85_v3 = vld [vmem:[%s125_s2] ss:$0 sm:$0xff] }
   0x6   :  { %53 = vmatpush.bf16.msra.mxu0 %v83_v1 }
   0x9   :  { %81 = vmatmul.msk.bf16.vlgmr.msra.gmra.mxu0 %vm42_vm0, %v82_v2 }
  0x86   :  { %v55_v4 = vpop.f32.mrf.mxu0 }
  0x87   :  { %v56_v5 = vadd.f32 %v85_v3, %v55_v4 }
  0x89   :  { %v60_v6 = vpack.c.bf16 %v56_v5, %v56_v5 }
  0x8b   :  { %63 = vst.msk [vmem:[%s127_s3] sm:$0xf] %vm62_vm1, %v60_v6 }
  0x8e   :  { %v57_v7 = vpop.f32.mrf.mxu0 }
  0x8f   :  { %v58_v8 = vadd.f32 %v85_v3, %v57_v7 }
  0x91   :  { %v61_v9 = vpack.c.bf16 %v58_v8, %v58_v8 }
  0x93   :  { %64 = vst.msk [vmem:[%s127_s3 + $0x4] sm:$0xf] %vm62_vm1, %v61_v9 }

// kernel: sentiment_classifier_forward.9
= control target key start
LH: loop header
LB: loop body
LE: loop exit
PB: predicated region body
PF: predicated region fallthrough
CT: control target
= control target key end

     0   :  { %vm18_vm0 = vcmask 261120   ;;  %v104_v5 = vmov 32.0   ;;  %vm84_vm6 = vcmask 257024   ;;  %s144_s0 = inlined_call_operand.vmem [shape: bf16[16,32], index: 0, kind: input, shape index: {}]   ;;  %s145_s1 = inlined_call_operand.vmem [shape: f32[1,32], index: 1, kind: input, shape index: {}]   ;;  %s146_s2 = inlined_call_operand.vmem [shape: f32[1,32], index: 2, kind: input, shape index: {}]   ;;  %s147_s3 = inlined_call_operand.vmem [shape: bf16[16,32], index: 3, kind: output, shape index: {}]  }
   0x1   :  { %v92_v0 = vld [vmem:[%s144_s0] sm:$0xff]   ;;  %98 = vrcp.f32 %v104_v5 }
   0x2   :  { %v93_v1 = vunpack.c.l.bf16 %v92_v0  ;;  %v94_v3 = vunpack.c.h.bf16 %v92_v0  ;;  %v96_v36 = vld [vmem:[%s145_s1] ss:$0 sm:$0xff] }
   0x3   :  { %v97_v39 = vld [vmem:[%s146_s2] ss:$0 sm:$0xff] }
   0x4   :  { %v19_v2 = vsel %vm18_vm0, %v93_v1, 0.0  ;;  %v22_v4 = vsel %vm18_vm0, %v94_v3, 0.0 }
   0x5   :  { %20 = vadd.xlane.f32.xlu0 %v19_v2 }
   0x7   :  { %v99_v6 = vpop.eup %98 }
   0x8   :  { %v26_v7 = vmul.f32 32.0, %v99_v6  ;;  %vm30_vm1 = vweird.f32 %v99_v6 }
   0xa   :  { %v27_v8 = vsub.f32 1.0, %v26_v7 }
   0xc   :  { %v28_v9 = vmul.f32 %v99_v6, %v27_v8 }
   0xd   :  { %23 = vadd.xlane.f32.xlu0 %v22_v4 }
   0xe   :  { %v29_v10 = vadd.f32 %v99_v6, %v28_v9 }
  0x10   :  { %v31_v11 = vsel %vm30_vm1, %v99_v6, %v29_v10 }
  0x78   :  { %v21_v12 = vpop.xlane.xlu0 %20 }
  0x79   :  { %v32_v13 = vmul.f32 %v31_v11, %v21_v12 }
  0x7b   :  { %v34_v14 = vsub.f32 %v93_v1, %v32_v13 }
  0x7d   :  { %v36_v15 = vmul.f32 %v34_v14, %v34_v14 }
  0x7f   :  { %v38_v16 = vsel %vm18_vm0, %v36_v15, 0.0 }
  0x80   :  { %39 = vadd.xlane.f32.xlu1 %v38_v16  ;;  %v24_v17 = vpop.xlane.xlu0 %23 }
  0x81   :  { %v33_v18 = vmul.f32 %v31_v11, %v24_v17 }
  0x83   :  { %v35_v19 = vsub.f32 %v94_v3, %v33_v18 }
  0x85   :  { %v37_v20 = vmul.f32 %v35_v19, %v35_v19 }
  0x87   :  { %v41_v21 = vsel %vm18_vm0, %v37_v20, 0.0 }
  0x88   :  { %42 = vadd.xlane.f32.xlu1 %v41_v21 }
  0xf3   :  { %v40_v22 = vpop.xlane.xlu1 %39 }
  0xf4   :  { %v44_v23 = vmul.f32 %v40_v22, %v31_v11 }
  0xf6   :  { %v46_v24 = vadd.f32 1e-12, %v44_v23 }
  0xf8   :  { %100 = vrsqrt.f32 %v46_v24  ;;  %vm54_vm3 = vweird.f32 %v46_v24 }
  0xfb   :  { %v43_v25 = vpop.xlane.xlu1 %42 }
  0xfc   :  { %v45_v26 = vmul.f32 %v43_v25, %v31_v11 }
  0xfe   :  { %v101_v27 = vpop.eup %100  ;;  %v47_v28 = vadd.f32 1e-12, %v45_v26 }
  0xff   :  { %v49_v29 = vmul.f32 %v101_v27, %v46_v24  ;;  %vm55_vm2 = vweird.f32 %v101_v27 }
 0x100   :  { %102 = vrsqrt.f32 %v47_v28  ;;  %vm56_vm4 = vmor %vm54_vm3, %vm55_vm2  ;;  %vm64_vm7 = vweird.f32 %v47_v28 }
 0x101   :  { %v50_v30 = vmul.f32 %v101_v27, %v49_v29 }
 0x103   :  { %v51_v31 = vmul.f32 0.5, %v50_v30 }
 0x105   :  { %v52_v32 = vsub.f32 1.5, %v51_v31 }
 0x106   :  { %v103_v33 = vpop.eup %102 }
 0x107   :  { %v53_v34 = vmul.f32 %v101_v27, %v52_v32  ;;  %v59_v35 = vmul.f32 %v103_v33, %v47_v28  ;;  %vm65_vm5 = vweird.f32 %v103_v33 }
 0x108   :  { %vm66_vm8 = vmor %vm64_vm7, %vm65_vm5 }
 0x109   :  { %v57_v37 = vsel %vm56_vm4, %v101_v27, %v53_v34  ;;  %v60_v38 = vmul.f32 %v103_v33, %v59_v35 }
 0x10a   :  { %v68_v40 = vmul.f32 %v57_v37, %v34_v14 }
 0x10b   :  { %v61_v41 = vmul.f32 0.5, %v60_v38 }
 0x10c   :  { %v74_v42 = vmul.f32 %v96_v36, %v68_v40 }
 0x10d   :  { %v62_v43 = vsub.f32 1.5, %v61_v41 }
 0x10e   :  { %v80_v44 = vadd.f32 %v97_v39, %v74_v42 }
 0x10f   :  { %v63_v45 = vmul.f32 %v103_v33, %v62_v43 }
 0x110   :  { %v82_v46 = vpack.c.bf16 %v80_v44, %v80_v44 }
 0x111   :  { %v67_v47 = vsel %vm66_vm8, %v103_v33, %v63_v45 }
 0x112   :  { %85 = vst.msk [vmem:[%s147_s3] sm:$0xf] %vm84_vm6, %v82_v46  ;;  %v69_v48 = vmul.f32 %v67_v47, %v35_v19 }
 0x114   :  { %v75_v49 = vmul.f32 %v96_v36, %v69_v48 }
 0x116   :  { %v81_v50 = vadd.f32 %v97_v39, %v75_v49 }
 0x118   :  { %v83_v51 = vpack.c.bf16 %v81_v50, %v81_v50 }
 0x11a   :  { %86 = vst.msk [vmem:[%s147_s3 + $0x4] sm:$0xf] %vm84_vm6, %v83_v51 }

// kernel: sentiment_classifier_forward.10
= control target key start
LH: loop header
LB: loop body
LE: loop exit
PB: predicated region body
PF: predicated region fallthrough
CT: control target
= control target key end

     0   :  { %vm42_vm0 = vcmask 261120   ;;  %vm62_vm1 = vcmask 781312   ;;  %s124_s1 = inlined_call_operand.vmem [shape: bf16[32,96], index: 1, kind: input, shape index: {}]   ;;  %s125_s2 = inlined_call_operand.vmem [shape: f32[1,96], index: 2, kind: input, shape index: {}]   ;;  %s126_s0 = inlined_call_operand.vmem [shape: bf16[16,32], index: 0, kind: input, shape index: {}]   ;;  %s127_s3 = inlined_call_operand.vmem [shape: bf16[16,96], index: 3, kind: output, shape index: {}]  }
   0x1   :  { %v84_v0 = vld [vmem:[%s124_s1 + $0x8] sm:$0xff]  ;;  %v83_v1 = vld [vmem:[%s124_s1] sm:$0xff] }
   0x2   :  { %52 = vmatpush.bf16.msra.mxu0 %v84_v0  ;;  %v82_v2 = vld [vmem:[%s126_s0] sm:$0xff] }
   0x3   :  { %v85_v3 = vld [vmem:[%s125_s2] ss:$0 sm:$0xff] }
   0x6   :  { %53 = vmatpush.bf16.msra.mxu0 %v83_v1 }
   0x9   :  { %81 = vmatmul.msk.bf16.vlgmr.msra.gmra.mxu0 %vm42_vm0, %v82_v2 }
  0x86   :  { %v55_v4 = vpop.f32.mrf.mxu0 }
  0x87   :  { %v56_v5 = vadd.f32 %v85_v3, %v55_v4 }
  0x89   :  { %v60_v6 = vpack.c.bf16 %v56_v5, %v56_v5 }
  0x8b   :  { %63 = vst.msk [vmem:[%s127_s3] sm:$0xf] %vm62_vm1, %v60_v6 }
  0x8e   :  { %v57_v7 = vpop.f32.mrf.mxu0 }
  0x8f   :  { %v58_v8 = vadd.f32 %v85_v3, %v57_v7 }
  0x91   :  { %v61_v9 = vpack.c.bf16 %v58_v8, %v58_v8 }
  0x93   :  { %64 = vst.msk [vmem:[%s127_s3 + $0x4] sm:$0xf] %vm62_vm1, %v61_v9 }

// kernel: sentiment_classifier_forward.11
= control target key start
LH: loop header
LB: loop body
LE: loop exit
PB: predicated region body
PF: predicated region fallthrough
CT: control target
= control target key end

     0   :  { %s564_s9 = smov 0   ;;  %s630_s0 = inlined_call_operand.vmem [shape: bf16[2,8,96], index: 0, kind: input, shape index: {}]   ;;  %s631_s1 = inlined_call_operand.vmem [shape: f32[2,1,8], index: 1, kind: input, shape index: {}]   ;;  %s632_s2 = inlined_call_operand.vmem [shape: bf16[2,8,32], index: 2, kind: output, shape index: {}]  }
   0x1 LB: > { %s471_s10 = sadd.s32 4294967295, %s533_s9   ;;  %p475_p0 = scmp.ge.s32.totalorder %s533_s9, 1  ;;  %s533_s9 = sphi %s564_s9, %s12_s9  }
   0x2   : > { %p119_p1 = scmp.lt.s32.totalorder %s533_s9, 3 }
   0x4   : > { %p120_p2 = pnand %p475_p0, %p119_p1 }
   0x5   : > { %p142_p3 = scmp.lt.s32.totalorder (!%p120_p2), %s471_s10, 1  ;;  %s535_s18 = smov (!%p120_p2), 96  }
   0x6   : > { %123 = sbr.rel (%p120_p2) target bundleno = 1204 (0x4b4), region = 28  ;;  %s536_s19 = smov (!%p120_p2), 88  }
   0x7   : > { %s537_s20 = smov (!%p120_p2), 120   ;;  %s538_s21 = smov (!%p120_p2), 64  }
   0x8   : > { %s539_s22 = smov (!%p120_p2), 80   ;;  %s540_s23 = smov (!%p120_p2), 72  }
   0x9   : > { %s541_s24 = smov (!%p120_p2), 112   ;;  %s542_s25 = smov (!%p120_p2), 104  }
   0xa   : > { %s543_s26 = smov (!%p120_p2), 56   ;;  %s544_s27 = smov (!%p120_p2), 40  }
   0xb   : > { %s634_s10 = smov (!%p142_p3, %s471_s10), 1  ;;  %vm164_vm0 = vcmask 64512   ;;  %vm201_vm1 = vcmask 1043456   ;;  %s545_s28 = smov 48   ;;  %vm279_vm2 = vcmask 130112   ;;  %vm341_vm3 = vcmask 195712  }
   0xc   : > { %s476_s11 = sshll.u32 %s634_s10, 2  ;;  %s148_s17 = scalar_lea.vmem %s631_s1, %s634_s10  ;;  %vm403_vm4 = vcmask 261312   ;;  %vm407_vm5 = vcmask 257024  }
   0xd   : > { %s145_s14 = scalar_lea.vmem %s630_s0, %s476_s11  ;;  %v510_v8 = vld [vmem:[%s148_s17] ss:$0 sm:$0xff]  ;;  %s546_s29 = smov 8  }
   0xe   : > { %v155_v0 = vld [vmem:[%s145_s14] sm:$0xf]  ;;  %s547_s30 = smov 16   ;;  %s548_s3 = smov 24  }
   0xf   : > { %v160_v1 = vunpack.c.l.b16 %v155_v0  ;;  %s152_s6 = scalar_lea.vmem %s632_s2, %s476_s11 }
  0x11   : > { %v584_v2 = vpack.c.b16 %v160_v1, %v160_v1 }
  0x13   : > { %162 = vrot.lane.b32.xlu0 %v584_v2, %s535_s18  ;;  %221 = vrot.lane.b32.xlu1 %v584_v2, %s536_s19 }
  0x14   : > { %219 = vrot.lane.b32.xlu2 %v584_v2, %s537_s20 }
  0x1c   : > { %196 = vrot.lane.b32.xlu2 %v584_v2, %s538_s21 }
  0x24   : > { %283 = vrot.lane.b32.xlu2 %v584_v2, %s539_s22 }
  0x2c   : > { %345 = vrot.lane.b32.xlu2 %v584_v2, %s540_s23 }
  0x34   : > { %281 = vrot.lane.b32.xlu2 %v584_v2, %s541_s24 }
  0x3c   : > { %343 = vrot.lane.b32.xlu2 %v584_v2, %s542_s25 }
  0x6e   : > { %v220_v7 = vpop.permute.xlu2 %219 }
  0x76   : > { %v197_v13 = vpop.permute.xlu2 %196 }
  0x77   : > { %v203_v18 = vsel %vm201_vm1, %v197_v13, 0 }
  0x78   : > { %212 = vmatpush.bf16.msra.mxu1 %v203_v18 }
  0x7e   : > { %v284_v14 = vpop.permute.xlu2 %283 }
  0x7f   : > { %v289_v16 = vsel %vm164_vm0, %v284_v14, 0 }
  0x80   : > { %298 = vmatpush.bf16.xpose.msrb.mxu1 %v289_v16 }
  0x85   : > { %v163_v3 = vpop.permute.xlu0 %162  ;;  %v222_v5 = vpop.permute.xlu1 %221 }
  0x86   : > { %v169_v4 = vsel %vm164_vm0, %v163_v3, 0  ;;  %v227_v6 = vsel %vm164_vm0, %v222_v5, 0  ;;  %v346_v15 = vpop.permute.xlu2 %345 }
  0x87   : > { %178 = vmatpush.bf16.xpose.msra.mxu0 %v169_v4  ;;  %236 = vmatpush.bf16.xpose.msra.mxu2 %v227_v6  ;;  %v351_v17 = vsel %vm164_vm0, %v346_v15, 0 }
  0x8e   : > { %478 = vmatmul.msk.bf16.vlgmr.msra.gmra.mxu0 %vm164_vm0, %v155_v0  ;;  %480 = vmatmul.msk.bf16.vlgmr.msra.gmra.mxu2 %vm164_vm0, %v220_v7  ;;  %v282_v19 = vpop.permute.xlu2 %281 }
  0x8f   : > { %360 = vmatpush.bf16.xpose.msrb.mxu0 %v351_v17 }
  0x96   : > { %v344_v20 = vpop.permute.xlu2 %343 }
  0x9e   : > { %484 = vmatmul.msk.bf16.vlgmr.msrb.gmra.mxu0 %vm164_vm0, %v344_v20 }
 0x10b   : > { %v180_v9 = vpop.f32.mrf.mxu0 }
 0x10c   : > { %v181_v10 = vadd.f32 %v510_v8, %v180_v9 }
 0x10e   : > { %v184_v11 = vsel %vm164_vm0, %v181_v10, -inf }
 0x10f   : > { %185 = vmax.xlane.f32.xlu0 %v184_v11 }
 0x111   : > { %v238_v21 = vpop.f32.mrf.mxu2 }
 0x112   : > { %v239_v22 = vadd.f32 %v510_v8, %v238_v21 }
 0x113   : > { %v182_v12 = vpop.f32.mrf.mxu0 }
 0x114   : > { %v242_v24 = vsel %vm164_vm0, %v239_v22, -inf }
 0x115   : > { %243 = vmax.xlane.f32.xlu2 %v242_v24 }
 0x119   : > { %v240_v27 = vpop.f32.mrf.mxu2 }
 0x11b   : > { %v362_v30 = vpop.f32.mrf.mxu0 }
 0x11c   : > { %v363_v31 = vadd.f32 %v510_v8, %v362_v30 }
 0x11e   : > { %v366_v32 = vsel %vm164_vm0, %v363_v31, -inf }
 0x123   : > { %v364_v34 = vpop.f32.mrf.mxu0 }
 0x182   : > { %v186_v23 = vpop.xlane.xlu0 %185 }
 0x183   : > { %v187_v25 = vsub.f32 %v181_v10, %v186_v23 }
 0x185   : > { %v188_v26 = vmul.f32 1.442695, %v187_v25 }
 0x187   : > { %511 = vpow2.f32 %v188_v26 }
 0x188   : > { %v244_v39 = vpop.xlane.xlu2 %243 }
 0x189   : > { %v245_v41 = vsub.f32 %v239_v22, %v244_v39 }
 0x18b   : > { %v246_v42 = vmul.f32 1.442695, %v245_v41 }
 0x18d   : > { %v512_v28 = vpop.eup %511 }
 0x18e   : > { %v190_v29 = vsel %vm164_vm0, %v512_v28, 0.0 }
 0x18f   : > { %191 = vadd.xlane.f32.xlu1 %v190_v29 }
 0x197   : > { %367 = vmax.xlane.f32.xlu1 %v366_v32 }
 0x1b0   : > { %254 = vrot.lane.b32.xlu1 %v584_v2, %s543_s26 }
 0x1b8   : > { %378 = vrot.lane.b32.xlu1 %v584_v2, %s544_s27 }
 0x202   : > { %v192_v33 = vpop.xlane.xlu1 %191 }
 0x203   : > { %513 = vrcp.f32 %v192_v33 }
 0x204   : > { %515 = vpow2.f32 %v246_v42 }
 0x209   : > { %v514_v35 = vpop.eup %513 }
 0x20a   : > { %v194_v36 = vmul.f32 %v514_v35, %v512_v28  ;;  %v368_v43 = vpop.xlane.xlu1 %367  ;;  %v516_v49 = vpop.eup %515 }
 0x20b   : > { %v369_v46 = vsub.f32 %v363_v31, %v368_v43  ;;  %v248_v51 = vsel %vm164_vm0, %v516_v49, 0.0 }
 0x20c   : > { %v195_v37 = vpack.c.bf16 %v194_v36, %v194_v36 }
 0x20d   : > { %v370_v48 = vmul.f32 1.442695, %v369_v46 }
 0x20e   : > { %479 = vmatmul.msk.bf16.vlgmr.msra.gmra.mxu1 %vm164_vm0, %v195_v37 }
 0x20f   : > { %517 = vpow2.f32 %v370_v48 }
 0x215   : > { %v518_v52 = vpop.eup %517 }
 0x216   : > { %v372_v53 = vsel %vm164_vm0, %v518_v52, 0.0 }
 0x21e   : > { %482 = vmatmul.msk.bf16.vlgmr.msrb.gmra.mxu1 %vm164_vm0, %v282_v19 }
 0x222   : > { %v255_v54 = vpop.permute.xlu1 %254 }
 0x223   : > { %v260_v55 = vsel %vm201_vm1, %v255_v54, 0 }
 0x224   : > { %269 = vmatpush.bf16.msra.mxu3 %v260_v55 }
 0x22a   : > { %v379_v56 = vpop.permute.xlu1 %378 }
 0x22b   : > { %v384_v57 = vsel %vm201_vm1, %v379_v56, 0 }
 0x22c   : > { %393 = vmatpush.bf16.msrb.mxu2 %v384_v57 }
 0x28b   : > { %v214_v38 = vpop.f32.mrf.mxu1 }
 0x28c   : > { %218 = vst.msk [vmem:[#allocation2] sm:$0xff] %vm164_vm0, %v214_v38 }
 0x293   : > { %v216_v40 = vpop.f32.mrf.mxu1 }
 0x29b   : > { %v300_v44 = vpop.f32.mrf.mxu1 }
 0x29c   : > { %v301_v45 = vadd.f32 %v510_v8, %v300_v44 }
 0x29e   : > { %v304_v47 = vsel %vm164_vm0, %v301_v45, -inf }
 0x29f   : > { %305 = vmax.xlane.f32.xlu0 %v304_v47 }
 0x2a3   : > { %v302_v50 = vpop.f32.mrf.mxu1 }
 0x2a7   : > { %249 = vadd.xlane.f32.xlu0 %v248_v51 }
 0x2af   : > { %373 = vadd.xlane.f32.xlu0 %v372_v53 }
 0x312   : > { %v306_v58 = vpop.xlane.xlu0 %305 }
 0x313   : > { %v307_v59 = vsub.f32 %v301_v45, %v306_v58 }
 0x315   : > { %v308_v60 = vmul.f32 1.442695, %v307_v59 }
 0x317   : > { %519 = vpow2.f32 %v308_v60 }
 0x31a   : > { %v250_v61 = vpop.xlane.xlu0 %249 }
 0x31b   : > { %521 = vrcp.f32 %v250_v61 }
 0x31d   : > { %v520_v62 = vpop.eup %519 }
 0x31e   : > { %v310_v63 = vsel %vm164_vm0, %v520_v62, 0.0 }
 0x31f   : > { %311 = vadd.xlane.f32.xlu0 %v310_v63 }
 0x321   : > { %v522_v0 = vpop.eup %521 }
 0x322   : > { %v374_v1 = vpop.xlane.xlu0 %373  ;;  %v252_v3 = vmul.f32 %v522_v0, %v516_v49 }
 0x323   : > { %523 = vrcp.f32 %v374_v1 }
 0x324   : > { %v253_v4 = vpack.c.bf16 %v252_v3, %v252_v3 }
 0x326   : > { %481 = vmatmul.msk.bf16.vlgmr.msra.gmra.mxu3 %vm164_vm0, %v253_v4 }
 0x329   : > { %v524_v5 = vpop.eup %523 }
 0x32a   : > { %v376_v6 = vmul.f32 %v524_v5, %v518_v52 }
 0x32c   : > { %v377_v7 = vpack.c.bf16 %v376_v6, %v376_v6 }
 0x32e   : > { %485 = vmatmul.msk.bf16.vlgmr.msrb.gmra.mxu2 %vm164_vm0, %v377_v7 }
 0x333   : > { %316 = vrot.lane.b32.xlu0 %v584_v2, %s545_s28 }
 0x392   : > { %v312_v8 = vpop.xlane.xlu0 %311 }
 0x393   : > { %525 = vrcp.f32 %v312_v8 }
 0x399   : > { %v526_v9 = vpop.eup %525 }
 0x39a   : > { %v314_v10 = vmul.f32 %v526_v9, %v520_v62 }
 0x39c   : > { %v315_v13 = vpack.c.bf16 %v314_v10, %v314_v10 }
 0x3a5   : > { %v317_v11 = vpop.permute.xlu0 %316 }
 0x3a6   : > { %v322_v12 = vsel %vm201_vm1, %v317_v11, 0 }
 0x3a7   : > { %331 = vmatpush.bf16.msrb.mxu3 %v322_v12 }
 0x3a9   : > { %v271_v14 = vpop.f32.mrf.mxu3 }
 0x3aa   : > { %483 = vmatmul.msk.bf16.vlgmr.msrb.gmra.mxu3 %vm164_vm0, %v315_v13  ;;  %276 = vrot.lane.b32.xlu2 %v271_v14, %s546_s29 }
 0x3b1   : > { %v273_v15 = vpop.f32.mrf.mxu3  ;;  %v395_v16 = vpop.f32.mrf.mxu2 }
 0x3b9   : > { %v397_v17 = vpop.f32.mrf.mxu2 }
 0x404   : > { %v277_v2 = vpop.permute.xlu2 %276 }
 0x405   : > { %280 = vst.msk [vmem:[#allocation2] sm:$0xff] %vm279_vm2, %v277_v2 }
 0x42d   : > { %v333_v18 = vpop.f32.mrf.mxu3 }
 0x42e   : > { %338 = vrot.lane.b32.xlu1 %v333_v18, %s547_s30 }
 0x435   : > { %v335_v19 = vpop.f32.mrf.mxu3 }
 0x436   : > { %400 = vrot.lane.b32.xlu1 %v395_v16, %s548_s3 }
 0x4a0   : > { %v339_v20 = vpop.permute.xlu1 %338 }
 0x4a1   : > { %342 = vst.msk [vmem:[#allocation2] sm:$0xff] %vm341_vm3, %v339_v20 }
 0x4a8   : > { %v401_v21 = vpop.permute.xlu1 %400 }
 0x4a9   : > { %404 = vst.msk [vmem:[#allocation2] sm:$0xff] %vm403_vm4, %v401_v21 }
 0x4b0   : > { %v405_v22 = vld [vmem:[#allocation2] sm:$0xff] }
 0x4b1   : > { %v406_v23 = vpack.c.bf16 %v405_v22, %v405_v22 }
 0x4b3   : > { %408 = vst.msk [vmem:[%s152_s6] sm:$0xf] %vm407_vm5, %v406_v23 }
 0x4b4 PF: > { %s12_s9 = sadd.s32 1, %s533_s9  }
 0x4b5   : > { %p9_p4 = scmp.ge.s32.totalorder %s12_s9, 4  }
 0x4b7   :  { %11 = sbr.rel (!%p9_p4) target bundleno = 1 (0x1), region = 61 }

// kernel: sentiment_classifier_forward.13
= control target key start
LH: loop header
LB: loop body
LE: loop exit
PB: predicated region body
PF: predicated region fallthrough
CT: control target
= control target key end

     0   :  { %vm27_vm0 = vcmask 261120   ;;  %v117_v10 = vmov 32.0   ;;  %vm93_vm6 = vcmask 257024   ;;  %s165_s0 = inlined_call_operand.vmem [shape: bf16[16,32], index: 0, kind: input, shape index: {}]   ;;  %s166_s1 = inlined_call_operand.vmem [shape: bf16[16,32], index: 1, kind: input, shape index: {}]   ;;  %s167_s2 = inlined_call_operand.vmem [shape: f32[1,32], index: 2, kind: input, shape index: {}]   ;;  %s168_s3 = inlined_call_operand.vmem [shape: f32[1,32], index: 3, kind: input, shape index: {}]   ;;  %s169_s4 = inlined_call_operand.vmem [shape: bf16[16,32], index: 4, kind: output, shape index: {}]  }
   0x1   :  { %v101_v0 = vld [vmem:[%s165_s0] sm:$0xff]   ;;  %111 = vrcp.f32 %v117_v10 }
   0x2   :  { %v105_v1 = vld [vmem:[%s166_s1] sm:$0xff]   ;;  %v102_v2 = vunpack.c.l.bf16 %v101_v0  ;;  %v103_v5 = vunpack.c.h.bf16 %v101_v0 }
   0x3   :  { %v106_v3 = vunpack.c.l.bf16 %v105_v1  ;;  %v107_v6 = vunpack.c.h.bf16 %v105_v1  ;;  %v109_v41 = vld [vmem:[%s167_s2] ss:$0 sm:$0xff] }
   0x4   :  { %v110_v44 = vld [vmem:[%s168_s3] ss:$0 sm:$0xff] }
   0x5   :  { %v25_v4 = vadd.f32 %v106_v3, %v102_v2  ;;  %v26_v8 = vadd.f32 %v107_v6, %v103_v5 }
   0x7   :  { %v28_v7 = vsel %vm27_vm0, %v25_v4, 0.0  ;;  %v31_v9 = vsel %vm27_vm0, %v26_v8, 0.0  ;;  %v112_v11 = vpop.eup %111 }
   0x8   :  { %29 = vadd.xlane.f32.xlu0 %v28_v7  ;;  %v35_v12 = vmul.f32 32.0, %v112_v11  ;;  %vm39_vm1 = vweird.f32 %v112_v11 }
   0xa   :  { %v36_v13 = vsub.f32 1.0, %v35_v12 }
   0xc   :  { %v37_v14 = vmul.f32 %v112_v11, %v36_v13 }
   0xe   :  { %v38_v15 = vadd.f32 %v112_v11, %v37_v14 }
  0x10   :  { %32 = vadd.xlane.f32.xlu0 %v31_v9  ;;  %v40_v16 = vsel %vm39_vm1, %v112_v11, %v38_v15 }
  0x7b   :  { %v30_v17 = vpop.xlane.xlu0 %29 }
  0x7c   :  { %v41_v18 = vmul.f32 %v40_v16, %v30_v17 }
  0x7e   :  { %v43_v19 = vsub.f32 %v25_v4, %v41_v18 }
  0x80   :  { %v45_v20 = vmul.f32 %v43_v19, %v43_v19 }
  0x82   :  { %v47_v21 = vsel %vm27_vm0, %v45_v20, 0.0 }
  0x83   :  { %48 = vadd.xlane.f32.xlu1 %v47_v21  ;;  %v33_v22 = vpop.xlane.xlu0 %32 }
  0x84   :  { %v42_v23 = vmul.f32 %v40_v16, %v33_v22 }
  0x86   :  { %v44_v24 = vsub.f32 %v26_v8, %v42_v23 }
  0x88   :  { %v46_v25 = vmul.f32 %v44_v24, %v44_v24 }
  0x8a   :  { %v50_v26 = vsel %vm27_vm0, %v46_v25, 0.0 }
  0x8b   :  { %51 = vadd.xlane.f32.xlu1 %v50_v26 }
  0xf6   :  { %v49_v27 = vpop.xlane.xlu1 %48 }
  0xf7   :  { %v53_v28 = vmul.f32 %v49_v27, %v40_v16 }
  0xf9   :  { %v55_v29 = vadd.f32 1e-12, %v53_v28 }
  0xfb   :  { %113 = vrsqrt.f32 %v55_v29  ;;  %vm63_vm3 = vweird.f32 %v55_v29 }
  0xfe   :  { %v52_v30 = vpop.xlane.xlu1 %51 }
  0xff   :  { %v54_v31 = vmul.f32 %v52_v30, %v40_v16 }
 0x101   :  { %v114_v32 = vpop.eup %113  ;;  %v56_v33 = vadd.f32 1e-12, %v54_v31 }
 0x102   :  { %v58_v34 = vmul.f32 %v114_v32, %v55_v29  ;;  %vm64_vm2 = vweird.f32 %v114_v32 }
 0x103   :  { %115 = vrsqrt.f32 %v56_v33  ;;  %vm65_vm4 = vmor %vm63_vm3, %vm64_vm2  ;;  %vm73_vm7 = vweird.f32 %v56_v33 }
 0x104   :  { %v59_v35 = vmul.f32 %v114_v32, %v58_v34 }
 0x106   :  { %v60_v36 = vmul.f32 0.5, %v59_v35 }
 0x108   :  { %v61_v37 = vsub.f32 1.5, %v60_v36 }
 0x109   :  { %v116_v38 = vpop.eup %115 }
 0x10a   :  { %v62_v39 = vmul.f32 %v114_v32, %v61_v37  ;;  %v68_v40 = vmul.f32 %v116_v38, %v56_v33  ;;  %vm74_vm5 = vweird.f32 %v116_v38 }
 0x10b   :  { %vm75_vm8 = vmor %vm73_vm7, %vm74_vm5 }
 0x10c   :  { %v66_v42 = vsel %vm65_vm4, %v114_v32, %v62_v39  ;;  %v69_v43 = vmul.f32 %v116_v38, %v68_v40 }
 0x10d   :  { %v77_v45 = vmul.f32 %v66_v42, %v43_v19 }
 0x10e   :  { %v70_v46 = vmul.f32 0.5, %v69_v43 }
 0x10f   :  { %v83_v47 = vmul.f32 %v109_v41, %v77_v45 }
 0x110   :  { %v71_v48 = vsub.f32 1.5, %v70_v46 }
 0x111   :  { %v89_v49 = vadd.f32 %v110_v44, %v83_v47 }
 0x112   :  { %v72_v50 = vmul.f32 %v116_v38, %v71_v48 }
 0x113   :  { %v91_v51 = vpack.c.bf16 %v89_v49, %v89_v49 }
 0x114   :  { %v76_v52 = vsel %vm75_vm8, %v116_v38, %v72_v50 }
 0x115   :  { %94 = vst.msk [vmem:[%s169_s4] sm:$0xf] %vm93_vm6, %v91_v51  ;;  %v78_v53 = vmul.f32 %v76_v52, %v44_v24 }
 0x117   :  { %v84_v54 = vmul.f32 %v109_v41, %v78_v53 }
 0x119   :  { %v90_v55 = vadd.f32 %v110_v44, %v84_v54 }
 0x11b   :  { %v92_v56 = vpack.c.bf16 %v90_v55, %v90_v55 }
 0x11d   :  { %95 = vst.msk [vmem:[%s169_s4 + $0x4] sm:$0xf] %vm93_vm6, %v92_v56 }

// kernel: sentiment_classifier_forward.14
= control target key start
LH: loop header
LB: loop body
LE: loop exit
PB: predicated region body
PF: predicated region fallthrough
CT: control target
= control target key end

     0   :  { %vm42_vm0 = vcmask 261120   ;;  %vm80_vm1 = vcmask 519168   ;;  %s146_s1 = inlined_call_operand.vmem [shape: bf16[32,64], index: 1, kind: input, shape index: {}]   ;;  %s147_s2 = inlined_call_operand.vmem [shape: f32[1,64], index: 2, kind: input, shape index: {}]   ;;  %s148_s0 = inlined_call_operand.vmem [shape: bf16[16,32], index: 0, kind: input, shape index: {}]   ;;  %s149_s3 = inlined_call_operand.vmem [shape: bf16[16,64], index: 3, kind: output, shape index: {}]  }
   0x1   :  { %v102_v0 = vld [vmem:[%s146_s1 + $0x8] sm:$0xff]  ;;  %v101_v1 = vld [vmem:[%s146_s1] sm:$0xff] }
   0x2   :  { %52 = vmatpush.bf16.msra.mxu0 %v102_v0  ;;  %v100_v2 = vld [vmem:[%s148_s0] sm:$0xff] }
   0x3   :  { %v103_v3 = vld [vmem:[%s147_s2] ss:$0 sm:$0xff] }
   0x6   :  { %53 = vmatpush.bf16.msra.mxu0 %v101_v1 }
   0x9   :  { %99 = vmatmul.msk.bf16.vlgmr.msra.gmra.mxu0 %vm42_vm0, %v100_v2 }
  0x86   :  { %v55_v4 = vpop.f32.mrf.mxu0 }
  0x87   :  { %v56_v5 = vadd.f32 %v103_v3, %v55_v4 }
  0x89   :  { %v60_v6 = vmul.f32 %v56_v5, %v56_v5 }
  0x8b   :  { %v62_v7 = vmul.f32 %v60_v6, %v56_v5 }
  0x8d   :  { %v64_v8 = vmul.f32 0.044715, %v62_v7 }
  0x8e   :  { %v57_v9 = vpop.f32.mrf.mxu0 }
  0x8f   :  { %v66_v10 = vadd.f32 %v64_v8, %v56_v5  ;;  %v58_v11 = vadd.f32 %v103_v3, %v57_v9 }
  0x91   :  { %v68_v12 = vmul.f32 0.7978846, %v66_v10  ;;  %v61_v13 = vmul.f32 %v58_v11, %v58_v11 }
  0x93   :  { %104 = vtanh.f32 %v68_v12  ;;  %v63_v14 = vmul.f32 %v61_v13, %v58_v11 }
  0x95   :  { %v65_v15 = vmul.f32 0.044715, %v63_v14 }
  0x97   :  { %v67_v16 = vadd.f32 %v65_v15, %v58_v11 }
  0x99   :  { %v105_v17 = vpop.eup %104  ;;  %v69_v18 = vmul.f32 0.7978846, %v67_v16 }
  0x9a   :  { %v72_v19 = vadd.f32 1.0, %v105_v17 }
  0x9b   :  { %106 = vtanh.f32 %v69_v18 }
  0x9c   :  { %v74_v20 = vmul.f32 0.5, %v72_v19 }
  0x9e   :  { %v76_v21 = vmul.f32 %v74_v20, %v56_v5 }
  0xa0   :  { %v78_v22 = vpack.c.bf16 %v76_v21, %v76_v21 }
  0xa1   :  { %v107_v23 = vpop.eup %106 }
  0xa2   :  { %81 = vst.msk [vmem:[%s149_s3] sm:$0xf] %vm80_vm1, %v78_v22  ;;  %v73_v24 = vadd.f32 1.0, %v107_v23 }
  0xa4   :  { %v75_v25 = vmul.f32 0.5, %v73_v24 }
  0xa6   :  { %v77_v26 = vmul.f32 %v75_v25, %v58_v11 }
  0xa8   :  { %v79_v27 = vpack.c.bf16 %v77_v26, %v77_v26 }
  0xaa   :  { %82 = vst.msk [vmem:[%s149_s3 + $0x4] sm:$0xf] %vm80_vm1, %v79_v27 }

// kernel: sentiment_classifier_forward.17
= control target key start
LH: loop header
LB: loop body
LE: loop exit
PB: predicated region body
PF: predicated region fallthrough
CT: control target
= control target key end

     0   :  { %s146_s0 = inlined_call_operand.vmem [shape: bf16[2,32], index: 0, kind: input, shape index: {}]   ;;  %s147_s1 = inlined_call_operand.vmem [shape: bf16[32,128], index: 1, kind: input, shape index: {}]   ;;  %s148_s2 = inlined_call_operand.vmem [shape: f32[1,128], index: 2, kind: input, shape index: {}]   ;;  %s149_s3 = inlined_call_operand.hbm [shape: f32[2,128], index: 3, kind: output, shape index: {}]  }
   0x1   :  { %v81_v0 = vld [vmem:[%s147_s1 + $0x8] sm:$0xff] }
   0x2   :  { %8 = vsyncpa [#allocation3], 0  ;;  %47 = vmatpush.bf16.msra.mxu0 %v81_v0  ;;  %v80_v1 = vld [vmem:[%s147_s1] sm:$0xff]  ;;  %vm37_vm0 = vcmask 261120   ;;  %s110_s20 = smov [#allocation2]   ;;  %s62_s24 = sshll.u32 %s149_s3, 4  ;;  %s63_s24 = int_to_ptr.hbm [resolvable:$true] %s62_s24 }
   0x3   :  { %v16_v2 = vld [vmem:[%s146_s0] sm:$0x1]  ;;  %s60_s21 = sshll.u32 %s110_s20, 4  ;;  %s61_s21 = int_to_ptr.vmem [resolvable:$true] %s60_s21 }
   0x4   :  { %v83_v3 = vld [vmem:[%s148_s2] ss:$0 sm:$0xff] }
   0x6   :  { %48 = vmatpush.bf16.msra.mxu0 %v80_v1 }
   0x9   :  { %79 = vmatmul.msk.bf16.vlgmr.msra.gmra.mxu0 %vm37_vm0, %v16_v2 }
  0x86   :  { %v50_v4 = vpop.f32.mrf.mxu0 }
  0x87   :  { %v51_v5 = vadd.f32 %v83_v3, %v50_v4 }
  0x89   :  { %54 = vst [vmem:[#allocation2] sm:$0x3] %v51_v5 }
  0x8a   :  { %65 = dma.vmem_to_hbm [thread:$0]  %s61_s21, 32, %s63_s24, [#allocation3]  }
  0x8e   :  { %v52_v6 = vpop.f32.mrf.mxu0 }
  0x8f   :  { %108 = dma.done.wait [#allocation3], 32  }
  0x90   :  { %109 = vsyncadd [#allocation3], 4294967264 }
  0x91   :  { %70 = vsyncpa [#allocation3], 1 }

// kernel: sentiment_classifier_forward.15
= control target key start
LH: loop header
LB: loop body
LE: loop exit
PB: predicated region body
PF: predicated region fallthrough
CT: control target
= control target key end

     0   :  { %vm58_vm0 = vcmask 523264   ;;  %vm78_vm1 = vcmask 257024   ;;  %s156_s1 = inlined_call_operand.vmem [shape: bf16[64,32], index: 1, kind: input, shape index: {}]   ;;  %s157_s2 = inlined_call_operand.vmem [shape: f32[1,32], index: 2, kind: input, shape index: {}]   ;;  %s158_s0 = inlined_call_operand.vmem [shape: bf16[16,64], index: 0, kind: input, shape index: {}]   ;;  %s159_s3 = inlined_call_operand.vmem [shape: bf16[16,32], index: 3, kind: output, shape index: {}]  }
   0x1   :  { %v110_v0 = vld [vmem:[%s156_s1 + $0x18] sm:$0xff]  ;;  %v109_v1 = vld [vmem:[%s156_s1 + $0x10] sm:$0xff]  ;;  %v108_v2 = vld [vmem:[%s156_s1 + $0x8] sm:$0xff] }
   0x2   :  { %66 = vmatpush.bf16.msra.mxu0 %v110_v0  ;;  %v107_v3 = vld [vmem:[%s156_s1] sm:$0xff] }
   0x3   :  { %v106_v4 = vld [vmem:[%s158_s0] sm:$0xff] }
   0x4   :  { %v111_v5 = vld [vmem:[%s157_s2] ss:$0 sm:$0xff] }
   0x6   :  { %67 = vmatpush.bf16.msra.mxu0 %v109_v1 }
   0xa   :  { %68 = vmatpush.bf16.msra.mxu0 %v108_v2 }
   0xe   :  { %69 = vmatpush.bf16.msra.mxu0 %v107_v3 }
  0x11   :  { %105 = vmatmul.msk.bf16.vlgmr.msra.gmra.mxu0 %vm58_vm0, %v106_v4 }
  0x8e   :  { %v71_v6 = vpop.f32.mrf.mxu0 }
  0x8f   :  { %v72_v7 = vadd.f32 %v111_v5, %v71_v6 }
  0x91   :  { %v76_v8 = vpack.c.bf16 %v72_v7, %v72_v7 }
  0x93   :  { %79 = vst.msk [vmem:[%s159_s3] sm:$0xf] %vm78_vm1, %v76_v8 }
  0x96   :  { %v73_v9 = vpop.f32.mrf.mxu0 }
  0x97   :  { %v74_v10 = vadd.f32 %v111_v5, %v73_v9 }
  0x99   :  { %v77_v11 = vpack.c.bf16 %v74_v10, %v74_v10 }
  0x9b   :  { %80 = vst.msk [vmem:[%s159_s3 + $0x4] sm:$0xf] %vm78_vm1, %v77_v11 }

</bundles_post_ra>
